<compile_context>
chip_gen: v6e
topology: v6e:2x2x1
jax: 0.10.0
libtpu: 0.0.40
codegen_flags: <defaults>
</compile_context>

<pallas_src>
import functools
import math

import jax
import jax.numpy as jnp
from jax import lax
from jax.experimental import pallas as pl
from jax.experimental.pallas import tpu as pltpu


def _round_up(x, n):
    return ((x + n - 1) // n) * n


# ---------------------------------------------------------------------------
# Kernel 1: GeM pooling + embedding Linear + L2 normalize (run once)
# ---------------------------------------------------------------------------
def _gem_embed_kernel(p_ref, feat_ref, emb_w_ref, emb_b_ref, emb_n_ref, *,
                      gem_eps):
    p = p_ref[0, 0]                                        # GeM p (SMEM scalar)
    x = feat_ref[...].astype(jnp.float32)                  # (B, HW, C), f32 math
    x = jnp.maximum(x, gem_eps)
    pooled = jnp.mean(x ** p, axis=1) ** (1.0 / p)         # reduce HW -> (B, C)

    # embedding = Linear(C -> E); emb_w already pre-transposed to (C, E)
    emb = jnp.dot(pooled, emb_w_ref[...],
                  preferred_element_type=jnp.float32) + emb_b_ref[...]  # (B, E)

    inv_norm = lax.rsqrt(jnp.maximum(
        jnp.sum(emb * emb, axis=-1, keepdims=True), 1e-24))
    emb_n_ref[...] = emb * inv_norm                        # F.normalize(emb)


# ---------------------------------------------------------------------------
# Kernel 2: ArcMarginProduct, tiled over the class dimension
# ---------------------------------------------------------------------------
def _arcmargin_kernel(label_ref, emb_n_ref, arc_w_ref, out_ref, *,
                      s, cos_m, sin_m, th, mm, ls_eps, easy_margin,
                      num_classes, tile_nc):
    j = pl.program_id(0)

    w = arc_w_ref[...].astype(jnp.float32)                 # (tile_nc, E)
    w_n = w * lax.rsqrt(jnp.maximum(
        jnp.sum(w * w, axis=-1, keepdims=True), 1e-24))    # F.normalize(weight)

    # cosine = emb_n @ w_n.T without an explicit transpose.
    cosine = lax.dot_general(
        emb_n_ref[...], w_n,
        dimension_numbers=(((1,), (1,)), ((), ())),
        preferred_element_type=jnp.float32)                # (B, tile_nc)

    sine = jnp.sqrt(jnp.clip(1.0 - cosine * cosine, 0.0, 1.0))
    phi = cosine * cos_m - sine * sin_m
    if easy_margin:
        phi = jnp.where(cosine > 0, phi, cosine)
    else:
        phi = jnp.where(cosine > th, phi, cosine - mm)

    # one-hot against the *global* class index of this tile.
    col = j * tile_nc + lax.broadcasted_iota(jnp.int32, cosine.shape, 1)
    one_hot = (col == label_ref[...]).astype(jnp.float32)  # labels: (B, 1)
    if ls_eps > 0:
        one_hot = (1.0 - ls_eps) * one_hot + ls_eps / num_classes

    out_ref[...] = (one_hot * phi + (1.0 - one_hot) * cosine) * s


# ---------------------------------------------------------------------------
# Wrapper
# ---------------------------------------------------------------------------
def happywhale_forward(features, labels, params, *, s=30.0, m=0.5,
                       easy_margin=False, ls_eps=0.0, gem_eps=1e-6,
                       tile_nc=1024):
    """features: (B, C, H, W) backbone feature maps (NCHW); labels: (B,) int."""
    B, C, H, W = features.shape
    HW = H * W

    # Lane-dense layout: channels last; bf16 storage for the big operand.
    feat = jnp.transpose(features, (0, 2, 3, 1)).reshape(B, HW, C)
    feat = feat.astype(jnp.bfloat16)
    emb_wT = params["emb_w"].T.astype(jnp.float32)              # (C, E)
    emb_b = params["emb_b"].reshape(1, -1).astype(jnp.float32)  # (1, E)
    gem_p = params["gem_p"].reshape(1, 1).astype(jnp.float32)   # (1, 1)
    E = emb_wT.shape[1]
    arc_w = params["arc_w"]
    NC = arc_w.shape[0]

    # ---- Phase 1: GeM + embedding + L2 normalize (runs once) ----
    emb_n = pl.pallas_call(
        functools.partial(_gem_embed_kernel, gem_eps=gem_eps),
        out_shape=jax.ShapeDtypeStruct((B, E), jnp.float32),
        grid=(1,),
        in_specs=[
            pl.BlockSpec((1, 1), lambda i: (0, 0),
                         memory_space=pltpu.MemorySpace.SMEM),  # GeM p
            pl.BlockSpec((B, HW, C), lambda i: (0, 0, 0)),      # features
            pl.BlockSpec((C, E), lambda i: (0, 0)),             # emb W^T
            pl.BlockSpec((1, E), lambda i: (0, 0)),             # emb bias
        ],
        out_specs=pl.BlockSpec((B, E), lambda i: (0, 0)),
        compiler_params=pltpu.CompilerParams(
            dimension_semantics=("arbitrary",)),
    )(gem_p, feat, emb_wT, emb_b)

    # ---- Phase 2: ArcMargin head, tiled + pipelined over classes ----
    nc_tile = min(tile_nc, _round_up(NC, 128))   # 128-aligned class tile
    nc_pad = _round_up(NC, nc_tile)              # lane-dense, even grid
    arc_w_p = jnp.zeros((nc_pad, E), jnp.bfloat16)
    arc_w_p = arc_w_p.at[:NC].set(arc_w.astype(jnp.bfloat16))
    labels2 = labels.reshape(B, 1).astype(jnp.int32)

    kernel = functools.partial(
        _arcmargin_kernel, s=s, cos_m=math.cos(m), sin_m=math.sin(m),
        th=math.cos(math.pi - m), mm=math.sin(math.pi - m) * m,
        ls_eps=ls_eps, easy_margin=easy_margin, num_classes=NC,
        tile_nc=nc_tile)

    out = pl.pallas_call(
        kernel,
        out_shape=jax.ShapeDtypeStruct((B, nc_pad), jnp.float32),
        grid=(nc_pad // nc_tile,),
        in_specs=[
            pl.BlockSpec((B, 1), lambda j: (0, 0)),             # labels (resident)
            pl.BlockSpec((B, E), lambda j: (0, 0)),             # emb_n (resident)
            pl.BlockSpec((nc_tile, E), lambda j: (j, 0)),       # arc_w class tile
        ],
        out_specs=pl.BlockSpec((B, nc_tile), lambda j: (0, j)),
        compiler_params=pltpu.CompilerParams(
            dimension_semantics=("parallel",),                  # v7x: 2 TCs
            vmem_limit_bytes=48 * 1024 * 1024),
    )(labels2, emb_n, arc_w_p)

    return out[:, :NC]


# ---------------------------------------------------------------------------
# Pure-JAX reference (mirrors the kernel's bf16 storage of the large operands)
# ---------------------------------------------------------------------------
def _reference(features, labels, params, *, s=30.0, m=0.5, easy_margin=False,
               ls_eps=0.0, gem_eps=1e-6):
    B, C, H, W = features.shape
    feats = features.astype(jnp.bfloat16).astype(jnp.float32)
    arc_w = params["arc_w"].astype(jnp.bfloat16).astype(jnp.float32)
    p = params["gem_p"][0]
    x = jnp.maximum(feats, gem_eps) ** p
    pooled = jnp.mean(x.reshape(B, C, H * W), axis=-1) ** (1.0 / p)
    emb = pooled @ params["emb_w"].T + params["emb_b"]
    emb_n = emb / jnp.maximum(jnp.linalg.norm(emb, axis=-1, keepdims=True), 1e-12)
    w_n = arc_w / jnp.maximum(jnp.linalg.norm(arc_w, axis=-1, keepdims=True), 1e-12)
    cosine = emb_n @ w_n.T
    sine = jnp.sqrt(jnp.clip(1.0 - cosine ** 2, 0.0, 1.0))
    phi = cosine * math.cos(m) - sine * math.sin(m)
    if easy_margin:
        phi = jnp.where(cosine > 0, phi, cosine)
    else:
        phi = jnp.where(cosine > math.cos(math.pi - m), phi,
                        cosine - math.sin(math.pi - m) * m)
    NC = arc_w.shape[0]
    one_hot = jax.nn.one_hot(labels, NC, dtype=jnp.float32)
    if ls_eps > 0:
        one_hot = (1.0 - ls_eps) * one_hot + ls_eps / NC
    return (one_hot * phi + (1.0 - one_hot) * cosine) * s


if __name__ == "__main__":
    # Small shapes: batch=2, backbone channels=128, spatial=8x8,
    # embedding_size=128, num_classes=300 (padded to 384 internally).
    B, C, H, W = 2, 128, 8, 8
    E, NC = 128, 300

    key = jax.random.PRNGKey(0)
    k_feat, k_embw, k_embb, k_arcw, k_lab = jax.random.split(key, 5)

    features = jax.random.normal(k_feat, (B, C, H, W), dtype=jnp.float32)
    labels = jax.random.randint(k_lab, (B,), 0, NC, dtype=jnp.int32)

    # nn.Linear default init (uniform +/- 1/sqrt(fan_in))
    lin_bound = 1.0 / math.sqrt(C)
    emb_w = jax.random.uniform(k_embw, (E, C), jnp.float32, -lin_bound, lin_bound)
    emb_b = jax.random.uniform(k_embb, (E,), jnp.float32, -lin_bound, lin_bound)
    # ArcMargin weight: xavier_uniform
    xav = math.sqrt(6.0 / (E + NC))
    arc_w = jax.random.uniform(k_arcw, (NC, E), jnp.float32, -xav, xav)

    params = {"gem_p": jnp.array([3.0], jnp.float32),
              "emb_w": emb_w, "emb_b": emb_b, "arc_w": arc_w}

    # tile_nc=128 so the class grid runs multiple (3) pipelined steps even at
    # this small NC, exercising the tiled + padded path.
    out = happywhale_forward(features, labels, params, tile_nc=128)
    out = jax.block_until_ready(out)

    ref = _reference(features, labels, params)
    assert out.shape == (B, NC)
    assert bool(jnp.allclose(out, ref, rtol=1e-3, atol=1e-3)), \
        float(jnp.max(jnp.abs(out - ref)))
    print("KERNEL_OK")
</pallas_src>

<mosaic_0001>
module attributes {stable_mosaic.version = 11 : i64} {
  func.func @_gem_embed_kernel(%arg0: i32, %arg1: memref<1x1xf32, #tpu.memory_space<smem>>, %arg2: memref<2x64x128xbf16, #tpu.memory_space<vmem>>, %arg3: memref<128x128xf32, #tpu.memory_space<vmem>>, %arg4: memref<1x128xf32, #tpu.memory_space<vmem>>, %arg5: memref<2x128xf32, #tpu.memory_space<vmem>>) attributes {dimension_semantics = [#tpu.dimension_semantics<arbitrary>], iteration_bounds = array<i64: 1>, scalar_prefetch = 0 : i64, scratch_operands = 0 : i64, tpu.core_type = #tpu.core_type<tc>, window_params = [{transform_indices = @transform_0, window_bounds = array<i64: 1, 1>}, {pipeline_mode = #tpu.pipeline_mode<synchronous>, transform_indices = @transform_1, window_bounds = array<i64: 2, 64, 128>}, {pipeline_mode = #tpu.pipeline_mode<synchronous>, transform_indices = @transform_2, window_bounds = array<i64: 128, 128>}, {pipeline_mode = #tpu.pipeline_mode<synchronous>, transform_indices = @transform_3, window_bounds = array<i64: 1, 128>}, {pipeline_mode = #tpu.pipeline_mode<synchronous>, transform_indices = @transform_4, window_bounds = array<i64: 2, 128>}]} {
    %c0 = arith.constant 0 : index
    %c0_0 = arith.constant 0 : index
    %0 = memref.load %arg1[%c0, %c0_0] : memref<1x1xf32, #tpu.memory_space<smem>>
    %c0_1 = arith.constant 0 : index
    %c0_2 = arith.constant 0 : index
    %c0_3 = arith.constant 0 : index
    %1 = vector.load %arg2[%c0_1, %c0_2, %c0_3] : memref<2x64x128xbf16, #tpu.memory_space<vmem>>, vector<2x64x128xbf16>
    %2 = arith.extf %1 : vector<2x64x128xbf16> to vector<2x64x128xf32>
    %cst = arith.constant 9.99999997E-7 : f32
    %3 = vector.broadcast %cst : f32 to vector<2x64x128xf32>
    %4 = arith.maximumf %2, %3 : vector<2x64x128xf32>
    %5 = vector.broadcast %0 : f32 to vector<2x64x128xf32>
    %6 = math.powf %4, %5 : vector<2x64x128xf32>
    %cst_4 = arith.constant dense<0.000000e+00> : vector<2x128xf32>
    %7 = vector.multi_reduction <add>, %6, %cst_4 [1] : vector<2x64x128xf32> to vector<2x128xf32>
    %cst_5 = arith.constant 6.400000e+01 : f32
    %8 = vector.broadcast %cst_5 : f32 to vector<2x128xf32>
    %9 = arith.divf %7, %8 : vector<2x128xf32>
    %cst_6 = arith.constant 1.000000e+00 : f32
    %10 = arith.divf %cst_6, %0 : f32
    %11 = vector.broadcast %10 : f32 to vector<2x128xf32>
    %12 = math.powf %9, %11 : vector<2x128xf32>
    %c0_7 = arith.constant 0 : index
    %c0_8 = arith.constant 0 : index
    %13 = vector.load %arg3[%c0_7, %c0_8] : memref<128x128xf32, #tpu.memory_space<vmem>>, vector<128x128xf32>
    %cst_9 = arith.constant dense<0.000000e+00> : vector<2x128xf32>
    %14 = tpu.matmul %12, %13, %cst_9 {dimension_numbers = #tpu.dot_dimension_numbers<[1], [0], [0], [1], [0, 0, 1, 1], [], []>} : vector<2x128xf32>, vector<128x128xf32>, vector<2x128xf32> -> vector<2x128xf32>
    %c0_10 = arith.constant 0 : index
    %c0_11 = arith.constant 0 : index
    %15 = vector.load %arg4[%c0_10, %c0_11] : memref<1x128xf32, #tpu.memory_space<vmem>>, vector<1x128xf32>
    %16 = vector.broadcast %15 : vector<1x128xf32> to vector<2x128xf32>
    %17 = arith.addf %14, %16 : vector<2x128xf32>
    %18 = arith.mulf %17, %17 : vector<2x128xf32>
    %cst_12 = arith.constant dense<0.000000e+00> : vector<2xf32>
    %19 = vector.multi_reduction <add>, %18, %cst_12 [1] : vector<2x128xf32> to vector<2xf32>
    %20 = vector.shape_cast %19 : vector<2xf32> to vector<2x1xf32>
    %cst_13 = arith.constant 1.000000e-24 : f32
    %21 = vector.broadcast %cst_13 : f32 to vector<2x1xf32>
    %22 = arith.maximumf %20, %21 : vector<2x1xf32>
    %23 = math.rsqrt %22 : vector<2x1xf32>
    %24 = vector.broadcast %23 : vector<2x1xf32> to vector<2x128xf32>
    %25 = arith.mulf %17, %24 : vector<2x128xf32>
    %c0_14 = arith.constant 0 : index
    %c0_15 = arith.constant 0 : index
    %26 = vector.load %arg5[%c0_14, %c0_15] : memref<2x128xf32, #tpu.memory_space<vmem>>, vector<2x128xf32>
    tpu.vector_store %arg5[%c0_14, %c0_15], %25 {strides = array<i32>} : memref<2x128xf32, #tpu.memory_space<vmem>>, vector<2x128xf32>,
    return
  }
  func.func @transform_0(%arg0: i32) -> (i32, i32) {
    %c0_i32 = arith.constant 0 : i32
    %c0_i32_0 = arith.constant 0 : i32
    %c0_i32_1 = arith.constant 0 : i32
    return %c0_i32, %c0_i32_0 : i32, i32
  }
  func.func @transform_1(%arg0: i32) -> (i32, i32, i32) {
    %c0_i32 = arith.constant 0 : i32
    %c0_i32_0 = arith.constant 0 : i32
    %c0_i32_1 = arith.constant 0 : i32
    %c0_i32_2 = arith.constant 0 : i32
    return %c0_i32, %c0_i32_0, %c0_i32_1 : i32, i32, i32
  }
  func.func @transform_2(%arg0: i32) -> (i32, i32) {
    %c0_i32 = arith.constant 0 : i32
    %c0_i32_0 = arith.constant 0 : i32
    %c0_i32_1 = arith.constant 0 : i32
    return %c0_i32, %c0_i32_0 : i32, i32
  }
  func.func @transform_3(%arg0: i32) -> (i32, i32) {
    %c0_i32 = arith.constant 0 : i32
    %c0_i32_0 = arith.constant 0 : i32
    %c0_i32_1 = arith.constant 0 : i32
    return %c0_i32, %c0_i32_0 : i32, i32
  }
  func.func @transform_4(%arg0: i32) -> (i32, i32) {
    %c0_i32 = arith.constant 0 : i32
    %c0_i32_0 = arith.constant 0 : i32
    %c0_i32_1 = arith.constant 0 : i32
    return %c0_i32, %c0_i32_0 : i32, i32
  }
}

</mosaic_0001>

<bundles_post_ra>
// kernel: tpu_custom_call.1
= control target key start
LH: loop header
LB: loop body
LE: loop exit
PB: predicated region body
PF: predicated region fallthrough
CT: control target
= control target key end

     0   :  { %10 = vsyncpa [#allocation4], 0  ;;  %s3272_s0 = inlined_call_operand.<no memory space> [shape: f32[1,1], index: 0, kind: input, shape index: {}]   ;;  %s3273_s1 = inlined_call_operand.hbm [shape: bf16[2,64,128], index: 1, kind: input, shape index: {}]   ;;  %s3274_s2 = inlined_call_operand.hbm [shape: f32[128,128], index: 2, kind: input, shape index: {}]   ;;  %s3275_s3 = inlined_call_operand.vmem [shape: f32[1,128], index: 3, kind: input, shape index: {}]   ;;  %s3276_s4 = inlined_call_operand.hbm [shape: f32[2,128], index: 4, kind: output, shape index: {}]  }
   0x1   :  { %11 = vsyncpa [#allocation7], 0 }
   0x2   :  { %12 = vsyncpa [#allocation5], 0  ;;  %s1454_s15 = smov [#allocation3]  }
   0x3   :  { %s20_s16 = sshll.u32 %s1454_s15, 4  ;;  %s21_s16 = int_to_ptr.vmem [resolvable:$true] %s20_s16 }
   0x4   :  { %s1396_s17 = scalar_lea.vmem %s21_s16, 1024  ;;  %p1401_p1 = scmp.lt.s32.totalorder %s21_s16, %s21_s16 }
   0x5   :  { %p1397_p0 = scmp.ne.s32.totalorder %s21_s16, %s1396_s17  ;;  %p1402_p2 = scmp.lt.s32.totalorder %s1396_s17, %s1396_s17 }
   0x7   :  { %p1403_p3 = por %p1402_p2, %p1401_p1 }
   0x9   :  { %p1404_p4 = pnand %p1403_p3, %p1397_p0 }
   0xb   :  { %1407 = shalt.err (!%p1404_p4)
}
   0xc   :  { %s1455_s18 = smov 64   ;;  %s1456_s19 = smov 4  }
   0xd   :  { %26 = dma.hbm_to_vmem [thread:$0]  %s3273_s1, 1024, %s21_s16, [#allocation4], %s1455_s18, %s1455_s18, %s1456_s19  }
   0xe   :  { %s1457_s22 = smov [#allocation6]  }
   0xf   :  { %s32_s23 = sshll.u32 %s1457_s22, 4  ;;  %s33_s23 = int_to_ptr.vmem [resolvable:$true] %s32_s23 }
  0x10   :  { %s1416_s24 = scalar_lea.vmem %s33_s23, 2048  ;;  %p1421_p6 = scmp.lt.s32.totalorder %s33_s23, %s33_s23 }
  0x11   :  { %p1417_p5 = scmp.ne.s32.totalorder %s33_s23, %s1416_s24  ;;  %p1422_p7 = scmp.lt.s32.totalorder %s1416_s24, %s1416_s24 }
  0x13   :  { %p1423_p8 = por %p1422_p7, %p1421_p6 }
  0x15   :  { %p1424_p9 = pnand %p1423_p8, %p1417_p5 }
  0x17   :  { %1427 = shalt.err (!%p1424_p9)
}
  0x18   :  { %s1458_s25 = smov 128   ;;  %s1459_s26 = smov 8  }
  0x19   :  { %38 = dma.hbm_to_vmem [thread:$0]  %s3274_s2, 2048, %s33_s23, [#allocation7], %s1458_s25, %s1458_s25, %s1459_s26  }
  0x1a   :  { %1448 = dma.done.wait [#allocation4], 1024  }
  0x1b   :  { %1449 = vsyncadd [#allocation4], 4294966272 }
  0x1c   :  { %1450 = dma.done.wait [#allocation7], 2048  }
  0x1d   :  { %1451 = vsyncadd [#allocation7], 4294965248  ;;  %v1499_v0 = vstv %s3272_s0  ;;  %v1460_v1 = vmov 0.0   ;;  %vm1461_vm0 = vmmov 0   ;;  %v163_v2 = vld [vmem:[#allocation6 + $0x78] sm:$0xff]  ;;  %v162_v3 = vld [vmem:[#allocation6 + $0x70] sm:$0xff] }
  0x1e   :  { %1312 = vrcp.f32 %v1499_v0  ;;  %328 = vmatprep.subr.mxu0 %v1460_v1  ;;  %360 = vmatprep.mubr.msk.f32.mxu0 %vm1461_vm0, %v1460_v1  ;;  %v161_v4 = vld [vmem:[#allocation6 + $0x68] sm:$0xff]  ;;  %v160_v5 = vld [vmem:[#allocation6 + $0x60] sm:$0xff]  ;;  %v159_v7 = vld [vmem:[#allocation6 + $0x58] sm:$0xff]  ;;  %v1526_v27 = vand.u32 2147483647, %v1499_v0  ;;  %v372_v39 = vtrunc.f32 %v1499_v0  ;;  %v3316_v50 = vmov 0 }
  0x1f   :  { %329 = vmatpush3.msra.mxu0 %v163_v2  ;;  %v273_v6 = vld [vmem:[#allocation3] sm:$0xff]   ;;  %v158_v10 = vld [vmem:[#allocation6 + $0x50] sm:$0xff]  ;;  %v304_v12 = vld [vmem:[#allocation3 + $0x8] sm:$0xff]   ;;  %vm3284_vm6 = vcmp.lt.f32.partialorder %v1499_v0, 0  ;;  %s1464_s5 = smov [#allocation8]  }
  0x20   :  { %330 = vmatprep.subr.mxu0 %v1460_v1  ;;  %v274_v9 = vunpack.c.l.bf16 %v273_v6  ;;  %v275_v11 = vunpack.c.h.bf16 %v273_v6  ;;  %v157_v13 = vld [vmem:[#allocation6 + $0x48] sm:$0xff]  ;;  %v156_v15 = vld [vmem:[#allocation6 + $0x40] sm:$0xff]  ;;  %v278_v16 = vunpack.c.l.bf16 %v304_v12  ;;  %v155_v18 = vld [vmem:[#allocation6 + $0x38] sm:$0xff]  ;;  %v279_v19 = vunpack.c.h.bf16 %v304_v12  ;;  %s261_s6 = sshll.u32 %s1464_s5, 4  ;;  %s262_s6 = int_to_ptr.vmem [resolvable:$true] %s261_s6 }
  0x21   :  { %331 = vmatpush3.msra.mxu0 %v162_v3  ;;  %v305_v20 = vld [vmem:[#allocation3 + $0x10] sm:$0xff]   ;;  %v153_v25 = vld [vmem:[#allocation6 + $0x28] sm:$0xff]  ;;  %v152_v29 = vld [vmem:[#allocation6 + $0x20] sm:$0xff]  ;;  %v376_v35 = vtrunc.f32 %v1526_v27  ;;  %vm3277_vm1 = vcmp.eq.f32.partialorder %v1526_v27, 2139095040  ;;  %vm373_vm2 = vcmp.ne.f32.partialorder %v1499_v0, %v372_v39  ;;  %vm375_vm7 = vcmp.lt.f32.partialorder %v1526_v27, 1266679808  ;;  %s1428_s7 = scalar_lea.vmem %s262_s6, 32  ;;  %p1433_p11 = scmp.lt.s32.totalorder %s262_s6, %s262_s6 }
  0x22   :  { %332 = vmatprep.subr.mxu0 %v1460_v1  ;;  %v1509_v14 = vmax.f32 %v274_v9, 1e-06  ;;  %v1512_v17 = vmax.f32 %v275_v11, 1e-06  ;;  %v154_v22 = vld [vmem:[#allocation6 + $0x30] sm:$0xff]  ;;  %v282_v26 = vunpack.c.l.bf16 %v305_v20  ;;  %v283_v31 = vunpack.c.h.bf16 %v305_v20  ;;  %v306_v32 = vld [vmem:[#allocation3 + $0x18] sm:$0xff]   ;;  %vm1565_vm3 = vmor %vm373_vm2, %vm3277_vm1  ;;  %p1429_p10 = scmp.ne.s32.totalorder %s262_s6, %s1428_s7  ;;  %p1434_p12 = scmp.lt.s32.totalorder %s1428_s7, %s1428_s7 }
  0x23   :  { %333 = vmatpush3.msra.mxu0 %v161_v4  ;;  %v1519_v23 = vmax.f32 %v278_v16, 1e-06  ;;  %v1528_v28 = vmax.f32 %v279_v19, 1e-06  ;;  %v151_v33 = vld [vmem:[#allocation6 + $0x18] sm:$0xff]  ;;  %v150_v37 = vld [vmem:[#allocation6 + $0x10] sm:$0xff]  ;;  %v286_v38 = vunpack.c.l.bf16 %v306_v32  ;;  %v377_v42 = vcvt.f32.s32 %v376_v35  ;;  %vm380_vm5 = vmneg %vm1565_vm3 }
  0x24   :  { %334 = vmatprep.subr.mxu0 %v1460_v1  ;;  %3313 = vst [vmem:[#allocation12_spill] sm:$0xff] %v1509_v14  ;;  %v1516_v21 = vand.u32 2147483647, %v1509_v14  ;;  %v1522_v24 = vand.u32 2147483647, %v1512_v17  ;;  %v149_v41 = vld [vmem:[#allocation6 + $0x8] sm:$0xff]  ;;  %v287_v46 = vunpack.c.h.bf16 %v306_v32  ;;  %p1435_p13 = por %p1434_p12, %p1433_p11 }
  0x25   :  { %335 = vmatpush3.msra.mxu0 %v160_v5  ;;  %v1534_v30 = vand.u32 2147483647, %v1519_v23  ;;  %v1537_v34 = vmax.f32 %v282_v26, 1e-06  ;;  %v1542_v36 = vand.u32 2147483647, %v1528_v28 }
  0x26   :  { %336 = vmatprep.subr.mxu0 %v1460_v1  ;;  %1314 = vlog2.f32 %v1516_v21  ;;  %v1546_v40 = vmax.f32 %v283_v31, 1e-06  ;;  %v148_v44 = vld [vmem:[#allocation6] sm:$0xff]  ;;  %v1554_v45 = vmax.f32 %v286_v38, 1e-06  ;;  %v378_v48 = vand.u32 1, %v377_v42  ;;  %p1436_p0 = pnand %p1435_p13, %p1429_p10 }
  0x27   :  { %337 = vmatpush3.msra.mxu0 %v159_v7  ;;  %1316 = vlog2.f32 %v1522_v24  ;;  %3314 = vst [vmem:[#allocation13_spill] sm:$0xff] %v1542_v36  ;;  %v1551_v43 = vand.u32 2147483647, %v1537_v34  ;;  %v307_v49 = vld [vmem:[#allocation3 + $0x20] sm:$0xff]   ;;  %v3317_v50 = vsel %vm1565_vm3, 4294967295, %v3316_v50  ;;  %v1578_v58 = vld [vmem:[#allocation3 + $0x28] sm:$0xff]  }
  0x28   :  { %338 = vmatprep.subr.mxu0 %v1460_v1  ;;  %1318 = vlog2.f32 %v1534_v30  ;;  %v1560_v47 = vand.u32 2147483647, %v1546_v40  ;;  %v1571_v52 = vand.u32 2147483647, %v1554_v45  ;;  %v1573_v54 = vmax.f32 %v287_v46, 1e-06 }
  0x29   :  { %339 = vmatpush3.msra.mxu0 %v158_v10  ;;  %1320 = vlog2.f32 %v1542_v36  ;;  %3315 = vst [vmem:[#allocation14_spill] sm:$0xff] %v1551_v43  ;;  %v290_v55 = vunpack.c.l.bf16 %v307_v49  ;;  %vm379_vm4 = vcmp.eq.s32.totalorder %v378_v48, 1  ;;  %v291_v57 = vunpack.c.h.bf16 %v307_v49  ;;  %v309_v10 = vld [vmem:[#allocation3 + $0x30] sm:$0xff]  }
  0x2a   :  { %340 = vmatprep.subr.mxu0 %v1460_v1  ;;  %1322 = vlog2.f32 %v1551_v43  ;;  %vm381_vm8 = vmand %vm379_vm4, %vm380_vm5  ;;  %v1585_v61 = vand.u32 2147483647, %v1573_v54  ;;  %v294_v63 = vunpack.c.l.bf16 %v1578_v58  ;;  %vm3279_vm9 = vcmp.eq.f32.partialorder %v1509_v14, 0 }
  0x2b   :  { %v1313_v8 = vpop.eup %1312  ;;  %341 = vmatpush3.msra.mxu0 %v157_v13  ;;  %1324 = vlog2.f32 %v1560_v47  ;;  %v1592_v3 = vmax.f32 %v291_v57, 1e-06  ;;  %vm387_vm10 = vcmp.gt.f32.partialorder %v1516_v21, 1065353216  ;;  %vm1596_vm11 = vmand %vm375_vm7, %vm381_vm8  ;;  %v3318_v5 = vmov 0 }
  0x2c   :  { %1195 = vpush %v1313_v8  ;;  %342 = vmatprep.subr.mxu0 %v1460_v1  ;;  %1326 = vlog2.f32 %v1571_v52  ;;  %v3319_v5 = vsel %vm1596_vm11, 4294967295, %v3318_v5  ;;  %vm3278_vm12 = vcmp.eq.f32.partialorder %v1512_v17, 0  ;;  %vm1605_vm13 = vmand %vm3284_vm6, %vm3279_vm9  ;;  %v3286_v8 = vmov 2139095040  }
  0x2d   :  { %343 = vmatpush3.msra.mxu0 %v156_v15  ;;  %v1612_v9 = vsel %vm3284_vm6, 0, %v3286_v8  ;;  %vm439_vm14 = vcmp.gt.f32.partialorder %v1522_v24, 1065353216  ;;  %vm3282_vm15 = vcmp.lt.f32.partialorder %v1509_v14, 0  ;;  %vm1619_vm0 = vmxor %vm3284_vm6, %vm387_vm10  ;;  %v310_v15 = vld [vmem:[#allocation3 + $0x38] sm:$0xff]   ;;  %v1627_v16 = vmax.f32 %v294_v63, 1e-06 }
  0x2e   :  { %344 = vmatprep.subr.mxu0 %v1460_v1  ;;  %vm1633_vm2 = vmand %vm3284_vm6, %vm3278_vm12  ;;  %v1638_v19 = vand.u32 2147483647, %v1592_v3  ;;  %vm3280_vm4 = vcmp.lt.f32.partialorder %v1512_v17, 0  ;;  %v299_v31 = vunpack.c.h.bf16 %v309_v10  ;;  %vm3281_vm8 = vcmp.lt.f32.partialorder %v1519_v23, 0 }
  0x2f   :  { %345 = vmatpush3.msra.mxu0 %v155_v18  ;;  %vm1647_vm5 = vmxor %vm3284_vm6, %vm439_vm14  ;;  %v302_v35 = vunpack.c.l.bf16 %v310_v15  ;;  %vm3283_vm14 = vcmp.eq.f32.partialorder %v1519_v23, 0  ;;  %v3330_v39 = vmov 0  ;;  %vm491_vm9 = vcmp.gt.f32.partialorder %v1534_v30, 1065353216 }
  0x30   :  { %346 = vmatprep.subr.mxu0 %v1460_v1  ;;  %vm1655_vm7 = vmand %vm3282_vm15, %vm1565_vm3  ;;  %v3287_v42 = vmov 0   ;;  %v3333_v46 = vmov 0  ;;  %vm400_vm15 = vcmp.eq.f32.partialorder %v1509_v14, 3212836864  ;;  %v3355_v18 = vmov 0 }
  0x31   :  { %347 = vmatpush3.msra.mxu0 %v154_v22  ;;  %v295_v22 = vunpack.c.h.bf16 %v1578_v58  ;;  %vm398_vm10 = vmor %vm1605_vm13, %vm1619_vm0  ;;  %v1719_v57 = vmax.f32 %v302_v35, 1e-06  ;;  %vm452_vm0 = vcmp.eq.f32.partialorder %v1512_v17, 3212836864  ;;  %vm3371_vm13 = vcmp.eq.f32.partialorder %v1537_v34, 0 }
  0x32   :  { %348 = vmatprep.subr.mxu0 %v1460_v1  ;;  %vm1671_vm1 = vmand %vm3280_vm4, %vm1565_vm3  ;;  %v3417_v8 = vmov 0 }
  0x33   :  { %349 = vmatpush3.msra.mxu0 %v153_v25  ;;  %v1315_v51 = vpop.eup %1314  ;;  %v404_v25 = vxor.u32 2147483648, %v1612_v9  ;;  %v3331_v39 = vsel %vm1671_vm1, 4294967295, %v3330_v39  ;;  %vm1693_vm4 = vmand %vm3281_vm8, %vm1565_vm3  ;;  %v1699_v49 = vmax.f32 %v295_v22, 1e-06  ;;  %3339 = vst [vmem:[#allocation18_spill] sm:$0xff] %v1719_v57 }
  0x34   :  { %350 = vmatprep.subr.mxu0 %v1460_v1  ;;  %v1317_v53 = vpop.eup %1316  ;;  %v365_v59 = vmul.f32 %v1315_v51, %v1499_v0  ;;  %v3334_v46 = vsel %vm1693_vm4, 4294967295, %v3333_v46  ;;  %vm1712_vm8 = vmand %vm3284_vm6, %vm3283_vm14  ;;  %vm3346_vm14 = vcmp.lt.f32.partialorder %v1509_v14, 0 }
  0x35   :  { %351 = vmatpush3.msra.mxu0 %v152_v29  ;;  %v1319_v56 = vpop.eup %1318  ;;  %v417_v60 = vmul.f32 %v1317_v53, %v1499_v0  ;;  %v298_v29 = vunpack.c.l.bf16 %v309_v10  ;;  %3335 = vst [vmem:[#allocation16_spill] sm:$0xff] %v1699_v49  ;;  %v1706_v53 = vsel %vm1596_vm11, %v404_v25, %v1612_v9  ;;  %vm1727_vm12 = vmxor %vm3284_vm6, %vm491_vm9  ;;  %vm3343_vm9 = vcmp.eq.f32.partialorder %v1528_v28, 0 }
  0x36   :  { %352 = vmatprep.subr.mxu0 %v1460_v1  ;;  %v1321_v62 = vpop.eup %1320  ;;  %v469_v2 = vmul.f32 %v1319_v56, %v1499_v0  ;;  %1328 = vpow2.f32 %v365_v59  ;;  %v1717_v56 = vmax.f32 %v299_v31, 1e-06  ;;  %vm1745_vm1 = vmand %vm3284_vm6, %vm3343_vm9  ;;  %vm3351_vm9 = vcmp.lt.f32.partialorder %v1512_v17, 0 }
  0x37   :  { %353 = vmatpush3.msra.mxu0 %v151_v33  ;;  %v521_v4 = vmul.f32 %v1321_v62, %v1499_v0  ;;  %1330 = vpow2.f32 %v417_v60  ;;  %v1323_v6 = vpop.eup %1322  ;;  %v1701_v51 = vmax.f32 %v298_v29, 1e-06  ;;  %v399_v60 = vsel %vm398_vm10, 2139095040, %v3287_v42 }
  0x38   :  { %354 = vmatprep.subr.mxu0 %v1460_v1  ;;  %1332 = vlog2.f32 %v1585_v61  ;;  %v573_v12 = vmul.f32 %v1323_v6, %v1499_v0  ;;  %v1325_v20 = vpop.eup %1324  ;;  %3338 = vst [vmem:[#allocation17_spill] sm:$0xff] %v1717_v56  ;;  %vm3347_vm10 = vcmp.gt.f32.partialorder %v1542_v36, 1065353216  ;;  %v1777_v10 = vsel %vm3351_vm9, %v1706_v53, %v1612_v9 }
  0x39   :  { %355 = vmatpush3.msra.mxu0 %v150_v37  ;;  %1334 = vpow2.f32 %v469_v2  ;;  %v625_v33 = vmul.f32 %v1325_v20, %v1499_v0  ;;  %v303_v37 = vunpack.c.h.bf16 %v310_v15  ;;  %v1327_v38 = vpop.eup %1326  ;;  %v1753_v2 = vsel %vm3346_vm14, %v1706_v53, %v1612_v9  ;;  %vm1761_vm4 = vmxor %vm3284_vm6, %vm3347_vm10 }
  0x3a   :  { %356 = vmatprep.subr.mxu0 %v1460_v1  ;;  %1336 = vpow2.f32 %v521_v4  ;;  %v677_v48 = vmul.f32 %v1327_v38, %v1499_v0  ;;  %vm3350_vm14 = vmor %vm1633_vm2, %vm1647_vm5  ;;  %vm3352_vm2 = vcmp.lt.s32.totalorder %v1509_v14, 0  ;;  %v1795_v15 = vsel %vm400_vm15, 1065353216, %v399_v60 }
  0x3b   :  { %357 = vmatpush3.msra.mxu0 %v149_v41  ;;  %1338 = vpow2.f32 %v573_v12  ;;  %v1682_v41 = vand.u32 2147483647, %v1627_v16  ;;  %v1721_v58 = vmax.f32 %v303_v37, 1e-06  ;;  %v451_v7 = vsel %vm3350_vm14, 2139095040, %v3287_v42  ;;  %vm1789_vm5 = vmand %vm3352_vm2, %vm1596_vm11 }
  0x3c   :  { %358 = vmatprep.subr.mxu0 %v1460_v1  ;;  %v1588_v1 = vmax.f32 %v290_v55, 1e-06  ;;  %v3353_v12 = vmov 0  ;;  %vm1801_vm9 = vcmp.ne.f32.partialorder %v1499_v0, %v1499_v0  ;;  %vm3357_vm2 = vcmp.lt.f32.partialorder %v1519_v23, 0 }
  0x3d   :  { %359 = vmatpush3.msra.mxu0 %v148_v44  ;;  %3332 = vst [vmem:[#allocation15_spill] sm:$0xff] %v1682_v41  ;;  %v1687_v44 = vsel %vm3284_vm6, 2139095040, %v3287_v42  ;;  %3340 = vst [vmem:[#allocation19_spill] sm:$0xff] %v1721_v58  ;;  %v3354_v12 = vsel %vm1789_vm5, 4294967295, %v3353_v12  ;;  %v3356_v18 = vsel %vm1801_vm9, 4294967295, %v3355_v18  ;;  %v1810_v20 = vsel %vm3357_vm2, %v1706_v53, %v1612_v9 }
  0x3e   :  { %v1625_v13 = vand.u32 2147483647, %v1588_v1  ;;  %vm3358_vm15 = vcmp.lt.f32.partialorder %v1528_v28, 0  ;;  %v1839_v32 = vsel %vm452_vm0, 1065353216, %v451_v7  ;;  %vm3362_vm2 = vcmp.lt.f32.partialorder %v1537_v34, 0 }
  0x3f   :  { %vm1816_vm6 = vmand %vm3358_vm15, %vm1565_vm3  ;;  %v1834_v29 = vsel %vm3358_vm15, %v1706_v53, %v1612_v9  ;;  %v3368_v38 = vmov 0  ;;  %v3378_v7 = vmov 0  ;;  %vm3395_vm5 = vcmp.lt.f32.partialorder %v1499_v0, 0 }
  0x40   :  { %1340 = vlog2.f32 %v1625_v13  ;;  %3361 = vst [vmem:[#allocation20_spill] sm:$0xff] %v1834_v29  ;;  %vm1849_vm15 = vmand %vm3362_vm2, %vm1565_vm3  ;;  %v3424_v60 = vmov 0 }
  0x41   :  { %1342 = vlog2.f32 %v1638_v19  ;;  %vm3365_vm0 = vmmov %vm3362_vm2  ;;  %vm3367_vm2 = vcmp.lt.s32.totalorder %v1512_v17, 0 }
  0x42   :  { %1344 = vpow2.f32 %v625_v33  ;;  %v1857_v35 = vsel %vm3365_vm0, %v1706_v53, %v1612_v9  ;;  %vm1866_vm14 = vmand %vm3367_vm2, %vm1596_vm11  ;;  %vm3381_vm2 = vcmp.lt.f32.partialorder %v1499_v0, 0 }
  0x43   :  { %1346 = vlog2.f32 %v1682_v41  ;;  %v1329_v63 = vpop.eup %1328  ;;  %3366 = vst [vmem:[#allocation21_spill] sm:$0xff] %v1857_v35  ;;  %v3369_v38 = vsel %vm1866_vm14, 4294967295, %v3368_v38  ;;  %vm3370_vm0 = vmor %vm1712_vm8, %vm1727_vm12  ;;  %vm3375_vm12 = vcmp.eq.f32.partialorder %v1509_v14, 0  ;;  %vm3376_vm8 = vnez %v3331_v39 }
  0x44   :  { %1348 = vpow2.f32 %v677_v48  ;;  %v1765_v6 = vpop.eup %1330  ;;  %v390_v26 = vsel %vm1655_vm7, 2143289344, %v1329_v63  ;;  %v503_v48 = vsel %vm3370_vm0, 2139095040, %v3287_v42  ;;  %vm3372_vm7 = vcmp.lt.f32.partialorder %v1499_v0, 0 }
  0x45   :  { %v1333_v11 = vpop.eup %1332  ;;  %vm1882_vm9 = vmand %vm3372_vm7, %vm3371_vm13  ;;  %v392_v59 = vsel %vm3375_vm12, %v1687_v44, %v390_v26  ;;  %v442_v63 = vsel %vm3376_vm8, 2143289344, %v1765_v6  ;;  %vm3377_vm13 = vcmp.lt.s32.totalorder %v1519_v23, 0  ;;  %vm3380_vm0 = vcmp.gt.f32.partialorder %v1551_v43, 1065353216 }
  0x46   :  { %v1335_v25 = vpop.eup %1334  ;;  %v729_v55 = vmul.f32 %v1333_v11, %v1499_v0  ;;  %vm1900_vm7 = vmand %vm3377_vm13, %vm1596_vm11  ;;  %v3386_v26 = vmov 0  ;;  %vm3388_vm8 = vcmp.lt.f32.partialorder %v1546_v40, 0  ;;  %vm3393_vm13 = vcmp.eq.f32.partialorder %v1519_v23, 3212836864 }
  0x47   :  { %v1337_v31 = vpop.eup %1336  ;;  %v3379_v7 = vsel %vm1900_vm7, 4294967295, %v3378_v7  ;;  %vm1908_vm10 = vmxor %vm3381_vm2, %vm3380_vm0  ;;  %vm3384_vm7 = vnez %v3334_v46  ;;  %vm3385_vm2 = vcmp.lt.s32.totalorder %v1528_v28, 0  ;;  %v1945_v42 = vsel %vm3393_vm13, 1065353216, %v503_v48 }
  0x48   :  { %v1339_v37 = vpop.eup %1338  ;;  %v494_v6 = vsel %vm3384_vm7, 2143289344, %v1335_v25  ;;  %vm1923_vm0 = vmand %vm3385_vm2, %vm1596_vm11  ;;  %v546_v58 = vsel %vm1816_vm6, 2143289344, %v1337_v31  ;;  %v394_v41 = vxor.u32 2147483648, %v392_v59  ;;  %vm3398_vm6 = vcmp.eq.f32.partialorder %v1512_v17, 0 }
  0x49   :  { %v3387_v26 = vsel %vm1923_vm0, 4294967295, %v3386_v26  ;;  %vm1931_vm12 = vmand %vm3388_vm8, %vm1565_vm3  ;;  %v598_v57 = vsel %vm1849_vm15, 2143289344, %v1339_v37  ;;  %v444_v22 = vsel %vm3398_vm6, %v1687_v44, %v442_v63  ;;  %vm3399_vm14 = vcmp.gt.f32.partialorder %v1560_v47, 1065353216 }
  0x4a   :  { %vm3391_vm7 = vmmov %vm3388_vm8  ;;  %1350 = vpow2.f32 %v729_v55  ;;  %vm3405_vm13 = vcmp.eq.f32.partialorder %v1519_v23, 0  ;;  %vm3294_vm0 = vcmp.lt.f32.partialorder %v1573_v54, 0  ;;  %v446_v35 = vxor.u32 2147483648, %v444_v22 }
  0x4b   :  { %v1939_v46 = vsel %vm3391_vm7, %v1706_v53, %v1612_v9  ;;  %vm3394_vm7 = vcmp.eq.f32.partialorder %v1546_v40, 0  ;;  %vm3400_vm15 = vmmov %vm3395_vm5  ;;  %v496_v37 = vsel %vm3405_vm13, %v1687_v44, %v494_v6  ;;  %vm3406_vm13 = vcmp.eq.f32.partialorder %v1528_v28, 0 }
  0x4c   :  { %3392 = vst [vmem:[#allocation22_spill] sm:$0xff] %v1939_v46  ;;  %vm1957_vm2 = vmand %vm3395_vm5, %vm3394_vm7  ;;  %vm3403_vm7 = vcmp.lt.f32.partialorder %v1554_v45, 0  ;;  %v548_v6 = vsel %vm3406_vm13, %v1687_v44, %v546_v58  ;;  %vm3408_vm5 = vcmp.lt.s32.totalorder %v1537_v34, 0  ;;  %v3411_v58 = vmov 0  }
  0x4d   :  { %v1341_v39 = vpop.eup %1340  ;;  %vm1969_vm8 = vmxor %vm3400_vm15, %vm3399_vm14  ;;  %v1979_v33 = vsel %vm3403_vm7, %v1706_v53, %v1612_v9  ;;  %vm3407_vm14 = vcmp.eq.f32.partialorder %v1537_v34, 0  ;;  %vm3435_vm13 = vcmp.eq.f32.partialorder %v1528_v28, 3212836864  ;;  %v3475_v46 = vmov 0 }
  0x4e   :  { %v1343_v25 = vpop.eup %1342  ;;  %3404 = vst [vmem:[#allocation23_spill] sm:$0xff] %v1979_v33  ;;  %v781_v55 = vmul.f32 %v1341_v39, %v1499_v0  ;;  %v600_v33 = vsel %vm3407_vm14, %v1687_v44, %v598_v57  ;;  %vm2005_vm15 = vmand %vm3408_vm5, %vm1596_vm11  ;;  %vm3438_vm5 = vcmp.lt.f32.partialorder %v1499_v0, 0 }
  0x4f   :  { %v1345_v48 = vpop.eup %1344  ;;  %v833_v39 = vmul.f32 %v1343_v25, %v1499_v0  ;;  %vm3412_vm14 = vmor %vm1745_vm1, %vm1761_vm4  ;;  %v2029_v25 = vsel %vm3294_vm0, %v1706_v53, %v1612_v9  ;;  %vm3414_vm1 = vnez %v3354_v12  ;;  %vm3415_vm4 = vnez %v3356_v18 }
  0x50   :  { %v1347_v63 = vpop.eup %1346  ;;  %v555_v57 = vsel %vm3412_vm14, 2139095040, %v3411_v58  ;;  %v650_v29 = vsel %vm1931_vm12, 2143289344, %v1345_v48  ;;  %3413 = vst [vmem:[#allocation24_spill] sm:$0xff] %v2029_v25  ;;  %v395_v4 = vsel %vm3414_vm1, %v394_v41, %v392_v59  ;;  %vm3416_vm12 = vcmp.ne.f32.partialorder %v1509_v14, %v1509_v14  ;;  %vm3419_vm1 = vmor %vm1882_vm9, %vm1908_vm10  ;;  %v3509_v25 = vld [vmem:[#allocation20_spill] sm:$0xff] }
  0x51   :  { %v1349_v62 = vpop.eup %1348  ;;  %vm2038_vm14 = vmor %vm3416_vm12, %vm3415_vm4  ;;  %v498_v48 = vxor.u32 2147483648, %v496_v37  ;;  %v607_v41 = vsel %vm3419_vm1, 2139095040, %v3411_v58  ;;  %1352 = vpow2.f32 %v781_v55  ;;  %vm3423_vm10 = vcmp.ne.f32.partialorder %v1512_v17, %v1512_v17 }
  0x52   :  { %v3418_v8 = vsel %vm2038_vm14, 4294967295, %v3417_v8  ;;  %vm3420_vm0 = vmmov %vm3403_vm7  ;;  %v550_v59 = vxor.u32 2147483648, %v548_v6  ;;  %v602_v11 = vxor.u32 2147483648, %v600_v33  ;;  %vm3428_vm1 = vcmp.lt.f32.partialorder %v1499_v0, 0 }
  0x53   :  { %vm2054_vm12 = vmand %vm3420_vm0, %vm1565_vm3  ;;  %vm3427_vm0 = vcmp.eq.f32.partialorder %v1554_v45, 0  ;;  %1354 = vpow2.f32 %v833_v39  ;;  %v885_v55 = vmul.f32 %v1347_v63, %v1499_v0  ;;  %v557_v43 = vsel %vm3435_vm13, 1065353216, %v555_v57  ;;  %v3510_v63 = vld [vmem:[#allocation13_spill] sm:$0xff] }
  0x54   :  { %vm2066_vm9 = vmor %vm3423_vm10, %vm3415_vm4  ;;  %vm3431_vm10 = vcmp.ne.f32.partialorder %v1519_v23, %v1519_v23  ;;  %v2104_v39 = vand.u32 2147483647, %v1699_v49  ;;  %vm3441_vm13 = vcmp.eq.f32.partialorder %v1499_v0, 0  ;;  %v3450_v49 = vmov 0 }
  0x55   :  { %v3425_v60 = vsel %vm2066_vm9, 4294967295, %v3424_v60  ;;  %vm2074_vm7 = vmand %vm3428_vm1, %vm3427_vm0  ;;  %vm3436_vm0 = vcmp.eq.f32.partialorder %v1546_v40, 0  ;;  %vm3437_vm1 = vcmp.gt.f32.partialorder %v1571_v52, 1065353216  ;;  %1356 = vpow2.f32 %v885_v55 }
  0x56   :  { %3426 = vst [vmem:[#allocation25_spill] sm:$0xff] %v3425_v60  ;;  %vm2084_vm6 = vmor %vm3431_vm10, %vm3415_vm4  ;;  %v3432_v60 = vmov 0  ;;  %v652_v36 = vsel %vm3436_vm0, %v1687_v44, %v650_v29  ;;  %v3443_v29 = vmov 0  ;;  %1358 = vlog2.f32 %v2104_v39 }
  0x57   :  { %v3433_v60 = vsel %vm2084_vm6, 4294967295, %v3432_v60  ;;  %vm2097_vm9 = vmxor %vm3438_vm5, %vm3437_vm1  ;;  %vm3442_vm6 = vcmp.eq.f32.partialorder %v1509_v14, 1065353216  ;;  %vm3445_vm5 = vnez %v3369_v38  ;;  %vm3446_vm1 = vcmp.ne.f32.partialorder %v1528_v28, %v1528_v28 }
  0x58   :  { %3434 = vst [vmem:[#allocation26_spill] sm:$0xff] %v3433_v60  ;;  %vm2110_vm0 = vmor %vm3442_vm6, %vm3441_vm13  ;;  %v447_v57 = vsel %vm3445_vm5, %v446_v35, %v444_v22  ;;  %v3447_v60 = vmov 0  ;;  %vm3449_vm6 = vcmp.ne.f32.partialorder %v1537_v34, %v1537_v34  ;;  %v702_v35 = vsel %vm2054_vm12, 2143289344, %v1349_v62 }
  0x59   :  { %v3444_v29 = vsel %vm2110_vm0, 4294967295, %v3443_v29  ;;  %vm2121_vm10 = vmor %vm3446_vm1, %vm3415_vm4  ;;  %vm3452_vm1 = vcmp.eq.f32.partialorder %v1526_v27, 2139095040  ;;  %vm3455_vm5 = vcmp.lt.s32.totalorder %v1546_v40, 0  ;;  %vm3459_vm14 = vcmp.eq.f32.partialorder %v1512_v17, 1065353216 }
  0x5a   :  { %v3448_v60 = vsel %vm2121_vm10, 4294967295, %v3447_v60  ;;  %vm2130_vm13 = vmor %vm3449_vm6, %vm3415_vm4  ;;  %v402_v38 = vsel %vm3452_vm1, %v1795_v15, %v395_v4  ;;  %vm3453_vm10 = vnez %v3379_v7  ;;  %vm3454_vm6 = vcmp.eq.f32.partialorder %v1537_v34, 3212836864 }
  0x5b   :  { %v3451_v49 = vsel %vm2130_vm13, 4294967295, %v3450_v49  ;;  %v499_v22 = vsel %vm3453_vm10, %v498_v48, %v496_v37  ;;  %v609_v14 = vsel %vm3454_vm6, 1065353216, %v607_v41  ;;  %vm2150_vm12 = vmand %vm3455_vm5, %vm1596_vm11  ;;  %vm3458_vm1 = vcmp.eq.f32.partialorder %v1499_v0, 0 }
  0x5c   :  { %vm2159_vm10 = vmor %vm3459_vm14, %vm3458_vm1  ;;  %v3460_v15 = vmov 0  ;;  %vm3463_vm13 = vcmp.eq.f32.partialorder %v1519_v23, 1065353216  ;;  %v3464_v7 = vmov 0  ;;  %vm3466_vm5 = vnez %v3387_v26 }
  0x5d   :  { %v3461_v15 = vsel %vm2159_vm10, 4294967295, %v3460_v15  ;;  %vm3462_vm6 = vmmov %vm3458_vm1  ;;  %v551_v37 = vsel %vm3466_vm5, %v550_v59, %v548_v6  ;;  %v603_v4 = vsel %vm2005_vm15, %v602_v11, %v600_v33  ;;  %v654_v48 = vxor.u32 2147483648, %v652_v36  ;;  %s1196_s0 = spop %1195 }
  0x5e   :  { %vm2167_vm0 = vmor %vm3463_vm13, %vm3462_vm6  ;;  %vm3468_vm6 = vcmp.eq.f32.partialorder %v1526_v27, 2139095040  ;;  %vm3470_vm5 = vcmp.eq.f32.partialorder %v1528_v28, 1065353216  ;;  %v3471_v26 = vmov 0  ;;  %vm3479_vm13 = vcmp.lt.f32.partialorder %v1499_v0, 0 }
  0x5f   :  { %v3465_v7 = vsel %vm2167_vm0, 4294967295, %v3464_v7  ;;  %vm3467_vm14 = vmor %vm1957_vm2, %vm1969_vm8  ;;  %v454_v56 = vsel %vm3468_vm6, %v1839_v32, %v447_v57  ;;  %vm3474_vm8 = vcmp.eq.f32.partialorder %v1537_v34, 1065353216  ;;  %vm3478_vm6 = vcmp.eq.f32.partialorder %v1573_v54, 0 }
  0x60   :  { %v659_v41 = vsel %vm3467_vm14, 2139095040, %v3411_v58  ;;  %vm3469_vm15 = vmmov %vm3458_vm1  ;;  %v3485_v12 = vmov 0 }
  0x61   :  { %vm2193_vm0 = vmor %vm3470_vm5, %vm3469_vm15  ;;  %vm3488_vm5 = vcmp.lt.f32.partialorder %v1499_v0, 0 }
  0x62   :  { %v3472_v26 = vsel %vm2193_vm0, 4294967295, %v3471_v26  ;;  %vm3473_vm2 = vmmov %vm3458_vm1  ;;  %vm3477_vm1 = vcmp.eq.f32.partialorder %v1554_v45, 0 }
  0x63   :  { %vm2201_vm14 = vmor %vm3474_vm8, %vm3473_vm2  ;;  %v704_v32 = vsel %vm3477_vm1, %v1687_v44, %v702_v35  ;;  %vm3482_vm2 = vcmp.lt.f32.partialorder %v1588_v1, 0  ;;  %vm3483_vm8 = vcmp.eq.f32.partialorder %v1526_v27, 2139095040 }
  0x64   :  { %v3476_v46 = vsel %vm2201_vm14, 4294967295, %v3475_v46  ;;  %vm2212_vm15 = vmand %vm3479_vm13, %vm3478_vm6  ;;  %v2221_v33 = vsel %vm3482_vm2, %v1706_v53, %v1612_v9  ;;  %v506_v6 = vsel %vm3483_vm8, %v1945_v42, %v499_v22  ;;  %vm3484_vm13 = vcmp.ne.f32.partialorder %v1546_v40, %v1546_v40 }
  0x65   :  { %vm2231_vm1 = vmor %vm3484_vm13, %vm3415_vm4  ;;  %vm3487_vm6 = vcmp.gt.f32.partialorder %v1585_v61, 1065353216  ;;  %vm3302_vm2 = vcmp.lt.f32.partialorder %v1592_v3, 0  ;;  %vm3491_vm13 = vcmp.eq.f32.partialorder %v1516_v21, 2139095040  ;;  %v1351_v21 = vpop.eup %1350  ;;  %v2280_v22 = vand.u32 2147483647, %v1701_v51 }
  0x66   :  { %v3486_v12 = vsel %vm2231_vm1, 4294967295, %v3485_v12  ;;  %vm2239_vm14 = vmxor %vm3488_vm5, %vm3487_vm6  ;;  %v407_v42 = vsel %vm3491_vm13, %v1753_v2, %v402_v38  ;;  %vm3494_vm5 = vcmp.eq.f32.partialorder %v1546_v40, 3212836864  ;;  %v706_v2 = vxor.u32 2147483648, %v704_v32 }
  0x67   :  { %vm3492_vm1 = vmmov %vm3483_vm8  ;;  %v661_v57 = vsel %vm3494_vm5, 1065353216, %v659_v41  ;;  %vm3495_vm8 = vcmp.lt.s32.totalorder %v1554_v45, 0  ;;  %vm3502_vm5 = vcmp.eq.f32.partialorder %v1534_v30, 2139095040  ;;  %v2308_v30 = vsel %vm3302_vm2, %v1706_v53, %v1612_v9 }
  0x68   :  { %v558_v11 = vsel %vm3492_vm1, %v557_v43, %v551_v37  ;;  %vm3493_vm10 = vmmov %vm3492_vm1  ;;  %vm3498_vm1 = vcmp.eq.f32.partialorder %v1522_v24, 2139095040  ;;  %v511_v24 = vsel %vm3502_vm5, %v1810_v20, %v506_v6  ;;  %v3512_v37 = vld [vmem:[#allocation21_spill] sm:$0xff]  ;;  %v3516_v41 = vmov 0 }
  0x69   :  { %v610_v55 = vsel %vm3493_vm10, %v609_v14, %v603_v4  ;;  %vm2260_vm0 = vmand %vm3495_vm8, %vm1596_vm11  ;;  %v459_v43 = vsel %vm3498_vm1, %v1777_v10, %v454_v56  ;;  %v655_v14 = vsel %vm2150_vm12, %v654_v48, %v652_v36  ;;  %vm3499_vm10 = vcmp.lt.f32.partialorder %v1573_v54, 0  ;;  %v3513_v4 = vld [vmem:[#allocation14_spill] sm:$0xff]  ;;  %v3524_v6 = vld [vmem:[#allocation25_spill] sm:$0xff] }
  0x6a   :  { %vm2273_vm13 = vmand %vm3499_vm10, %vm1565_vm3  ;;  %vm3503_vm12 = vcmp.eq.f32.partialorder %v1499_v0, 0  ;;  %vm3504_vm1 = vcmp.eq.f32.partialorder %v1546_v40, 1065353216  ;;  %v3505_v36 = vmov 0  ;;  %1360 = vlog2.f32 %v2280_v22 }
  0x6b   :  { %vm2289_vm6 = vmor %vm3504_vm1, %vm3503_vm12  ;;  %vm3508_vm1 = vnez %v3418_v8  ;;  %v3519_v8 = vmov 0  ;;  %vm3534_vm2 = vcmp.gt.f32.partialorder %v1625_v13, 1065353216 }
  0x6c   :  { %v3506_v36 = vsel %vm2289_vm6, 4294967295, %v3505_v36  ;;  %vm3507_vm10 = vmor %vm2074_vm7, %vm2097_vm9  ;;  %v411_v20 = vsel %vm3508_vm1, 2143289344, %v407_v42  ;;  %vm3511_vm7 = vcmp.eq.f32.partialorder %v3510_v63, 2139095040  ;;  %vm3514_vm9 = vcmp.eq.f32.partialorder %v3513_v4, 2139095040  ;;  %v3531_v63 = vld [vmem:[#allocation26_spill] sm:$0xff] }
  0x6d   :  { %v711_v10 = vsel %vm3507_vm10, 2139095040, %v3411_v58  ;;  %v563_v62 = vsel %vm3511_vm7, %v3509_v25, %v558_v11  ;;  %v615_v48 = vsel %vm3514_vm9, %v3512_v37, %v610_v55  ;;  %vm3515_vm10 = vcmp.ne.f32.partialorder %v1554_v45, %v1554_v45  ;;  %v3538_v37 = vld [vmem:[#allocation17_spill] sm:$0xff] }
  0x6e   :  { %vm2324_vm8 = vmor %vm3515_vm10, %vm3415_vm4  ;;  %vm3518_vm1 = vcmp.lt.s32.totalorder %v1573_v54, 0  ;;  %vm3521_vm9 = vcmp.lt.f32.partialorder %v1588_v1, 0  ;;  %vm3525_vm10 = vnez %v3524_v6  ;;  %v754_v55 = vsel %vm2273_vm13, 2143289344, %v1351_v21 }
  0x6f   :  { %v3517_v41 = vsel %vm2324_vm8, 4294967295, %v3516_v41  ;;  %vm2332_vm5 = vmand %vm3518_vm1, %vm1596_vm11  ;;  %v463_v42 = vsel %vm3525_vm10, 2143289344, %v459_v43  ;;  %vm3526_vm1 = vcmp.eq.f32.partialorder %v1526_v27, 2139095040  ;;  %vm3527_vm7 = vcmp.eq.f32.partialorder %v1588_v1, 0  ;;  %v1353_v43 = vpop.eup %1352 }
  0x70   :  { %v3520_v8 = vsel %vm2332_vm5, 4294967295, %v3519_v8  ;;  %vm2341_vm12 = vmand %vm3521_vm9, %vm1565_vm3  ;;  %v662_v11 = vsel %vm3526_vm1, %v661_v57, %v655_v14  ;;  %vm3528_vm9 = vcmp.lt.f32.partialorder %v1499_v0, 0  ;;  %vm3532_vm1 = vnez %v3531_v63 }
  0x71   :  { %vm2357_vm11 = vmand %vm3528_vm9, %vm3527_vm7  ;;  %v515_v57 = vsel %vm3532_vm1, 2143289344, %v511_v24  ;;  %v707_v14 = vsel %vm2260_vm0, %v706_v2, %v704_v32  ;;  %vm3533_vm13 = vcmp.eq.f32.partialorder %v1554_v45, 3212836864  ;;  %v2380_v4 = vand.u32 2147483647, %v3538_v37  ;;  %v1355_v24 = vpop.eup %1354 }
  0x72   :  { %v713_v21 = vsel %vm3533_vm13, 1065353216, %v711_v10  ;;  %vm3535_vm7 = vmmov %vm3528_vm9  ;;  %vm3540_vm0 = vnez %v3444_v29  ;;  %vm3541_vm1 = vnez %v3448_v60  ;;  %vm3542_vm13 = vnez %v3451_v49  ;;  %v3550_v49 = vld [vmem:[#allocation15_spill] sm:$0xff]  ;;  %v3551_v60 = vld [vmem:[#allocation22_spill] sm:$0xff]  ;;  %v1357_v6 = vpop.eup %1356 }
  0x73   :  { %vm2373_vm9 = vmxor %vm3535_vm7, %vm3534_vm2  ;;  %3539 = vst [vmem:[#allocation20_spill] sm:$0xff] %v2380_v4  ;;  %v413_v32 = vsel %vm3540_vm0, 1065353216, %v411_v20  ;;  %v567_v35 = vsel %vm3541_vm1, 2143289344, %v563_v62  ;;  %v619_v2 = vsel %vm3542_vm13, 2143289344, %v615_v48  ;;  %vm3543_vm2 = vcmp.eq.f32.partialorder %v1499_v0, 0 }
  0x74   :  { %vm3544_vm7 = vcmp.eq.f32.partialorder %v1554_v45, 1065353216  ;;  %v3545_v10 = vmov 0  ;;  %vm3547_vm5 = vcmp.lt.f32.partialorder %v1592_v3, 0  ;;  %vm3552_vm13 = vcmp.eq.f32.partialorder %v1560_v47, 2139095040 }
  0x75   :  { %vm2392_vm10 = vmor %vm3544_vm7, %vm3543_vm2  ;;  %v667_v20 = vsel %vm3552_vm13, %v3551_v60, %v662_v11  ;;  %vm3553_vm2 = vcmp.eq.f32.partialorder %v1573_v54, 0  ;;  %vm3558_vm13 = vcmp.lt.f32.partialorder %v1627_v16, 0  ;;  %1362 = vlog2.f32 %v2380_v4 }
  0x76   :  { %v3546_v10 = vsel %vm2392_vm10, 4294967295, %v3545_v10  ;;  %vm2400_vm8 = vmand %vm3547_vm5, %vm1565_vm3  ;;  %v756_v62 = vsel %vm3553_vm2, %v1687_v44, %v754_v55  ;;  %vm3554_vm5 = vcmp.eq.f32.partialorder %v1592_v3, 0  ;;  %vm3555_vm10 = vcmp.lt.f32.partialorder %v1499_v0, 0 }
  0x77   :  { %vm2418_vm6 = vmand %vm3555_vm10, %vm3554_vm5  ;;  %v2428_v47 = vsel %vm3558_vm13, %v1706_v53, %v1612_v9  ;;  %vm3559_vm2 = vnez %v3461_v15  ;;  %vm3560_vm10 = vnez %v3465_v7  ;;  %vm3561_vm5 = vcmp.eq.f32.partialorder %v1526_v27, 2139095040  ;;  %v1359_v15 = vpop.eup %1358 }
  0x78   :  { %v465_v11 = vsel %vm3559_vm2, 1065353216, %v463_v42  ;;  %v517_v55 = vsel %vm3560_vm10, 1065353216, %v515_v57  ;;  %v714_v63 = vsel %vm3561_vm5, %v713_v21, %v707_v14  ;;  %v806_v60 = vsel %vm2341_vm12, 2143289344, %v1353_v43  ;;  %v3566_v42 = vld [vmem:[#allocation12_spill] sm:$0xff] }
  0x79   :  { %vm3562_vm13 = vcmp.gt.f32.partialorder %v1638_v19, 1065353216  ;;  %vm3563_vm0 = vcmp.lt.f32.partialorder %v1499_v0, 0  ;;  %vm3567_vm2 = vcmp.eq.f32.partialorder %v1499_v0, 1065353216  ;;  %vm3568_vm10 = vnez %v3472_v26 }
  0x7a   :  { %vm2444_vm7 = vmxor %vm3563_vm0, %vm3562_vm13  ;;  %v2451_v7 = vsel %vm3567_vm2, %v3566_v42, %v413_v32  ;;  %v569_v57 = vsel %vm3568_vm10, 1065353216, %v567_v35  ;;  %vm3569_vm5 = vnez %v3476_v46  ;;  %v858_v43 = vsel %vm2400_vm8, 2143289344, %v1355_v24  ;;  %v3577_v24 = vld [vmem:[#allocation23_spill] sm:$0xff] }
  0x7b   :  { %v621_v56 = vsel %vm3569_vm5, 1065353216, %v619_v2  ;;  %vm3570_vm2 = vnez %v3486_v12  ;;  %v758_v26 = vxor.u32 2147483648, %v756_v62  ;;  %vm3571_vm10 = vmor %vm2212_vm15, %vm2239_vm14  ;;  %vm3572_vm5 = vcmp.lt.f32.partialorder %v1627_v16, 0 }
  0x7c   :  { %v671_v14 = vsel %vm3570_vm2, 2143289344, %v667_v20  ;;  %v763_v46 = vsel %vm3571_vm10, 2139095040, %v3411_v58  ;;  %vm2477_vm12 = vmand %vm3572_vm5, %vm1565_vm3  ;;  %v937_v12 = vmul.f32 %v1359_v15, %v1499_v0  ;;  %vm3575_vm2 = vcmp.eq.f32.partialorder %v1499_v0, 1065353216  ;;  %v3603_v15 = vld [vmem:[#allocation18_spill] sm:$0xff] }
  0x7d   :  { %v2487_v31 = vsel %vm3575_vm2, %v1512_v17, %v465_v11  ;;  %vm3576_vm14 = vmmov %vm3575_vm2  ;;  %vm3578_vm15 = vcmp.eq.f32.partialorder %v1571_v52, 2139095040  ;;  %vm3579_vm10 = vcmp.eq.f32.partialorder %v1588_v1, 0  ;;  %v910_v2 = vsel %vm2477_vm12, 2143289344, %v1357_v6  ;;  %v3639_v11 = vld [vmem:[#allocation24_spill] sm:$0xff] }
  0x7e   :  { %v2492_v59 = vsel %vm3576_vm14, %v1519_v23, %v517_v55  ;;  %v719_v32 = vsel %vm3578_vm15, %v3577_v24, %v714_v63  ;;  %v808_v35 = vsel %vm3579_vm10, %v1687_v44, %v806_v60  ;;  %vm3580_vm8 = vmmov %vm3575_vm2  ;;  %vm3581_vm14 = vcmp.ne.f32.partialorder %v1573_v54, %v1573_v54  ;;  %v3596_v55 = vld [vmem:[#allocation16_spill] sm:$0xff] }
  0x7f   :  { %v2508_v17 = vsel %vm3580_vm8, %v1528_v28, %v569_v57  ;;  %vm2515_vm15 = vmor %vm3581_vm14, %vm3415_vm4  ;;  %vm3584_vm10 = vcmp.eq.f32.partialorder %v1592_v3, 0  ;;  %vm3585_vm8 = vcmp.eq.f32.partialorder %v1627_v16, 0  ;;  %1364 = vpow2.f32 %v937_v12 }
  0x80   :  { %v860_v52 = vsel %vm3584_vm10, %v1687_v44, %v858_v43  ;;  %vm3586_vm13 = vmmov %vm3563_vm0  ;;  %vm3590_vm10 = vnez %v3506_v36  ;;  %vm3592_vm5 = vcmp.gt.f32.partialorder %v3550_v49, 1065353216  ;;  %vm3600_vm12 = vcmp.lt.s32.totalorder %v1588_v1, 0 }
  0x81   :  { %vm2529_vm1 = vmand %vm3586_vm13, %vm3585_vm8  ;;  %v673_v20 = vsel %vm3590_vm10, 1065353216, %v671_v14  ;;  %vm3598_vm10 = vnez %v3520_v8  ;;  %v810_v60 = vxor.u32 2147483648, %v808_v35  ;;  %v2566_v42 = vand.u32 2147483647, %v3603_v15 }
  0x82   :  { %vm3589_vm14 = vmmov %vm3575_vm2  ;;  %vm3591_vm2 = vcmp.eq.f32.partialorder %v1573_v54, 3212836864  ;;  %v759_v36 = vsel %vm3598_vm10, %v758_v26, %v756_v62  ;;  %vm3609_vm10 = vcmp.lt.s32.totalorder %v1592_v3, 0  ;;  %v862_v57 = vxor.u32 2147483648, %v860_v52 }
  0x83   :  { %v2536_v29 = vsel %vm3589_vm14, %v1537_v34, %v621_v56  ;;  %v765_v6 = vsel %vm3591_vm2, 1065353216, %v763_v46  ;;  %vm3593_vm13 = vmmov %vm3563_vm0  ;;  %vm3597_vm14 = vnez %v3517_v41  ;;  %vm3599_vm2 = vnez %v3319_v5  ;;  %v1361_v56 = vpop.eup %1360 }
  0x84   :  { %vm2547_vm8 = vmxor %vm3593_vm13, %vm3592_vm5  ;;  %v723_v34 = vsel %vm3597_vm14, 2143289344, %v719_v32  ;;  %vm3604_vm13 = vcmp.eq.f32.partialorder %v1499_v0, 0  ;;  %vm3605_vm14 = vcmp.eq.f32.partialorder %v1573_v54, 1065353216  ;;  %1366 = vlog2.f32 %v2566_v42 }
  0x85   :  { %vm2560_vm3 = vmand %vm3600_vm12, %vm3599_vm2  ;;  %v3621_v14 = vmov 0  ;;  %v3643_v63 = vmov 0  ;;  %v113_v23 = vadd.f32 %v2487_v31, %v2451_v7 }
  0x86   :  { %vm2572_vm0 = vmor %vm3605_vm14, %vm3604_vm13  ;;  %vm3615_vm14 = vcmp.ne.f32.partialorder %v1588_v1, %v1588_v1  ;;  %v811_v26 = vsel %vm2560_vm3, %v810_v60, %v808_v35 }
  0x87   :  { %vm3608_vm12 = vmor %vm2357_vm11, %vm2373_vm9  ;;  %vm3613_vm11 = vcmp.eq.f32.partialorder %v1627_v16, 0  ;;  %vm3614_vm9 = vcmp.eq.f32.partialorder %v1499_v0, 1065353216 }
  0x88   :  { %v815_v8 = vsel %vm3608_vm12, 2139095040, %v3411_v58  ;;  %vm2586_vm5 = vmand %vm3609_vm10, %vm3599_vm2  ;;  %v912_v38 = vsel %vm3613_vm11, %v1687_v44, %v910_v2  ;;  %v2602_v43 = vsel %vm3614_vm9, %v1546_v40, %v673_v20  ;;  %vm3619_vm11 = vcmp.eq.f32.partialorder %v1526_v27, 2139095040 }
  0x89   :  { %vm3612_vm13 = vmor %vm2418_vm6, %vm2444_vm7  ;;  %v766_v4 = vsel %vm3619_vm11, %v765_v6, %v759_v36  ;;  %vm3620_vm9 = vcmp.ne.f32.partialorder %v1592_v3, %v1592_v3  ;;  %vm3624_vm11 = vcmp.eq.f32.partialorder %v1592_v3, 3212836864  ;;  %v914_v24 = vxor.u32 2147483648, %v912_v38  ;;  %v3637_v6 = vld [vmem:[#allocation19_spill] sm:$0xff] }
  0x8a   :  { %v867_v25 = vsel %vm3612_vm13, 2139095040, %v3411_v58  ;;  %vm2609_vm12 = vmor %vm3615_vm14, %vm3415_vm4  ;;  %vm3618_vm13 = vnez %v3546_v10  ;;  %v989_v10 = vmul.f32 %v1361_v56, %v1499_v0  ;;  %vm3628_vm10 = vcmp.eq.f32.partialorder %v1499_v0, 0 }
  0x8b   :  { %v725_v40 = vsel %vm3618_vm13, 1065353216, %v723_v34  ;;  %vm2629_vm14 = vmor %vm3620_vm9, %vm3415_vm4  ;;  %vm3623_vm13 = vcmp.eq.f32.partialorder %v1588_v1, 3212836864  ;;  %v869_v21 = vsel %vm3624_vm11, 1065353216, %v867_v25  ;;  %vm3625_vm9 = vcmp.lt.s32.totalorder %v1627_v16, 0 }
  0x8c   :  { %v3622_v14 = vsel %vm2629_vm14, 4294967295, %v3621_v14  ;;  %v817_v46 = vsel %vm3623_vm13, 1065353216, %v815_v8  ;;  %vm2647_vm7 = vmand %vm3625_vm9, %vm3599_vm2  ;;  %vm3629_vm6 = vcmp.eq.f32.partialorder %v1588_v1, 1065353216  ;;  %v863_v35 = vsel %vm2586_vm5, %v862_v57, %v860_v52  ;;  %v1363_v52 = vpop.eup %1362 }
  0x8d   :  { %vm2655_vm3 = vmor %vm3629_vm6, %vm3628_vm10  ;;  %vm3633_vm11 = vcmp.eq.f32.partialorder %v3596_v55, 0  ;;  %vm3634_vm9 = vcmp.lt.f32.partialorder %v1499_v0, 0  ;;  %1368 = vpow2.f32 %v989_v10  ;;  %v2676_v34 = vand.u32 2147483647, %v3637_v6 }
  0x8e   :  { %vm3632_vm13 = vmor %vm2529_vm1, %vm2547_vm8  ;;  %vm3638_vm5 = vcmp.eq.f32.partialorder %v1499_v0, 1065353216  ;;  %vm3640_vm1 = vcmp.eq.f32.partialorder %v1585_v61, 2139095040  ;;  %vm3642_vm6 = vcmp.eq.f32.partialorder %v1592_v3, 1065353216  ;;  %v3652_v8 = vmov 0 }
  0x8f   :  { %v919_v2 = vsel %vm3632_vm13, 2139095040, %v3411_v58  ;;  %vm2671_vm14 = vmand %vm3634_vm9, %vm3633_vm11  ;;  %v2681_v28 = vsel %vm3638_vm5, %v1554_v45, %v725_v40  ;;  %v771_v36 = vsel %vm3640_vm1, %v3639_v11, %v766_v4  ;;  %vm3645_vm13 = vcmp.gt.f32.partialorder %v2104_v39, 1065353216 }
  0x90   :  { %vm3641_vm8 = vmmov %vm3628_vm10  ;;  %vm3649_vm1 = vcmp.lt.f32.partialorder %v3596_v55, 0  ;;  %v1041_v62 = vmul.f32 %v1363_v52, %v1499_v0  ;;  %1370 = vlog2.f32 %v2676_v34  ;;  %v915_v25 = vsel %vm2647_vm7, %v914_v24, %v912_v38 }
  0x91   :  { %vm2690_vm10 = vmor %vm3642_vm6, %vm3641_vm8  ;;  %v2707_v45 = vsel %vm3649_vm1, %v1706_v53, %v1612_v9  ;;  %vm3650_vm8 = vcmp.eq.f32.partialorder %v1526_v27, 2139095040  ;;  %vm3651_vm6 = vcmp.ne.f32.partialorder %v1627_v16, %v1627_v16  ;;  %v775_v40 = vsel %vm2515_vm15, 2143289344, %v771_v36 }
  0x92   :  { %v3644_v63 = vsel %vm2690_vm10, 4294967295, %v3643_v63  ;;  %vm3646_vm11 = vmmov %vm3634_vm9  ;;  %v818_v61 = vsel %vm3650_vm8, %v817_v46, %v811_v26  ;;  %v3658_v38 = vmov 0  ;;  %1372 = vpow2.f32 %v1041_v62  ;;  %v1365_v46 = vpop.eup %1364 }
  0x93   :  { %vm2698_vm9 = vmxor %vm3646_vm11, %vm3645_vm13  ;;  %vm3664_vm15 = vcmp.eq.f32.partialorder %v1625_v13, 2139095040  ;;  %vm1011_vm11 = vcmp.gt.f32.partialorder %v2280_v22, 1065353216  ;;  %vm3671_vm5 = vcmp.ne.f32.partialorder %v3596_v55, %v3596_v55 }
  0x94   :  { %vm2716_vm13 = vmor %vm3651_vm6, %vm3415_vm4  ;;  %vm3661_vm6 = vcmp.lt.f32.partialorder %v3596_v55, 0  ;;  %v823_v10 = vsel %vm3664_vm15, %v2221_v33, %v818_v61  ;;  %vm3669_vm15 = vcmp.eq.f32.partialorder %v1526_v27, 2139095040  ;;  %v3694_v61 = vld [vmem:[#allocation20_spill] sm:$0xff] }
  0x95   :  { %v3653_v8 = vsel %vm2716_vm13, 4294967295, %v3652_v8  ;;  %vm3654_vm1 = vmmov %vm3650_vm8  ;;  %vm3655_vm8 = vcmp.eq.f32.partialorder %v1627_v16, 3212836864  ;;  %vm3657_vm13 = vcmp.eq.f32.partialorder %v1627_v16, 1065353216  ;;  %v827_v41 = vsel %vm2609_vm12, 2143289344, %v823_v10 }
  0x96   :  { %v870_v57 = vsel %vm3654_vm1, %v869_v21, %v863_v35  ;;  %v921_v56 = vsel %vm3655_vm8, 1065353216, %v919_v2  ;;  %vm3656_vm1 = vcmp.eq.f32.partialorder %v1499_v0, 0  ;;  %vm3660_vm8 = vnez %v3317_v50 }
  0x97   :  { %vm2742_vm7 = vmor %vm3657_vm13, %vm3656_vm1  ;;  %vm3665_vm13 = vcmp.lt.s32.totalorder %v3596_v55, 0  ;;  %v922_v33 = vsel %vm3669_vm15, %v921_v56, %v915_v25  ;;  %vm3684_vm12 = vcmp.eq.f32.partialorder %v3550_v49, 2139095040 }
  0x98   :  { %v3659_v38 = vsel %vm2742_vm7, 4294967295, %v3658_v38  ;;  %vm2750_vm10 = vmand %vm3661_vm6, %vm3660_vm8  ;;  %vm3668_vm7 = vcmp.eq.f32.partialorder %v1638_v19, 2139095040  ;;  %v114_v19 = vadd.f32 %v2492_v59, %v113_v23  ;;  %v927_v20 = vsel %vm3684_vm12, %v2428_v47, %v922_v33 }
  0x99   :  { %vm2764_vm1 = vmand %vm3665_vm13, %vm3599_vm2  ;;  %v875_v13 = vsel %vm3668_vm7, %v2308_v30, %v870_v57  ;;  %v777_v30 = vsel %vm2572_vm0, 1065353216, %v775_v40  ;;  %v962_v21 = vsel %vm2750_vm10, 2143289344, %v1365_v46  ;;  %vm3675_vm7 = vcmp.lt.f32.partialorder %v1499_v0, 0 }
  0x9a   :  { %vm3670_vm13 = vmor %vm2671_vm14, %vm2698_vm9  ;;  %vm3674_vm9 = vcmp.eq.f32.partialorder %v1701_v51, 0  ;;  %vm3679_vm10 = vcmp.eq.f32.partialorder %v3596_v55, 0  ;;  %v115_v2 = vadd.f32 %v2508_v17, %v114_v19  ;;  %v1367_v17 = vpop.eup %1366  ;;  %vm3704_vm0 = vcmp.eq.f32.partialorder %v2104_v39, 2139095040 }
  0x9b   :  { %v971_v7 = vsel %vm3670_vm13, 2139095040, %v3411_v58  ;;  %vm2787_vm6 = vmor %vm3671_vm5, %vm3415_vm4  ;;  %vm3678_vm5 = vcmp.lt.f32.partialorder %v1701_v51, 0  ;;  %v964_v24 = vsel %vm3679_vm10, %v1687_v44, %v962_v21  ;;  %vm3685_vm10 = vcmp.eq.f32.partialorder %v3596_v55, 3212836864  ;;  %v1369_v40 = vpop.eup %1368 }
  0x9c   :  { %vm2801_vm15 = vmand %vm3675_vm7, %vm3674_vm9  ;;  %v2809_v59 = vsel %vm3678_vm5, %v1706_v53, %v1612_v9  ;;  %vm3683_vm5 = vnez %v3622_v14  ;;  %v966_v52 = vxor.u32 2147483648, %v964_v24  ;;  %v973_v11 = vsel %vm3685_vm10, 1065353216, %v971_v7 }
  0x9d   :  { %vm3680_vm13 = vmmov %vm3675_vm7  ;;  %v879_v48 = vsel %vm3683_vm5, 2143289344, %v875_v13  ;;  %vm3690_vm5 = vcmp.eq.f32.partialorder %v1499_v0, 1065353216  ;;  %vm3309_vm10 = vcmp.eq.f32.partialorder %v3538_v37, 0  ;;  %v116_v47 = vadd.f32 %v2536_v29, %v115_v2  ;;  %v1371_v26 = vpop.eup %1370 }
  0x9e   :  { %vm2822_vm9 = vmxor %vm3680_vm13, %vm1011_vm11  ;;  %vm3686_vm11 = vcmp.eq.f32.partialorder %v1499_v0, 0  ;;  %vm3687_vm13 = vcmp.eq.f32.partialorder %v3596_v55, 1065353216  ;;  %v778_v49 = vsel %vm3690_vm5, %v1573_v54, %v777_v30  ;;  %v829_v14 = vsel %vm2655_vm3, 1065353216, %v827_v41 }
  0x9f   :  { %vm2839_vm14 = vmor %vm3687_vm13, %vm3686_vm11  ;;  %v967_v60 = vsel %vm2764_vm1, %v966_v52, %v964_v24  ;;  %vm3691_vm11 = vcmp.lt.f32.partialorder %v1701_v51, 0  ;;  %v1093_v62 = vmul.f32 %v1367_v17, %v1499_v0  ;;  %vm3696_vm3 = vnez %v3653_v8  ;;  %v1373_v33 = vpop.eup %1372 }
  0xa0   :  { %vm1022_vm12 = vmor %vm2801_vm15, %vm2822_vm9  ;;  %vm1063_vm15 = vcmp.gt.f32.partialorder %v3694_v61, 1065353216  ;;  %vm3695_vm9 = vnez %v3644_v63  ;;  %v931_v32 = vsel %vm3696_vm3, 2143289344, %v927_v20  ;;  %vm3697_vm1 = vcmp.eq.f32.partialorder %v1526_v27, 2139095040 }
  0xa1   :  { %vm2862_vm13 = vmand %vm3691_vm11, %vm3660_vm8  ;;  %v881_v29 = vsel %vm3695_vm9, 1065353216, %v879_v48  ;;  %v974_v57 = vsel %vm3697_vm1, %v973_v11, %v967_v60  ;;  %vm3698_vm5 = vcmp.lt.s32.totalorder %v1701_v51, 0  ;;  %v117_v56 = vadd.f32 %v2602_v43, %v116_v47 }
  0xa2   :  { %vm2878_vm11 = vmand %vm3698_vm5, %vm3599_vm2  ;;  %v1023_v63 = vsel %vm1022_vm12, 2139095040, %v3411_v58  ;;  %vm3701_vm3 = vcmp.lt.f32.partialorder %v3538_v37, 0  ;;  %1374 = vpow2.f32 %v1093_v62  ;;  %v979_v43 = vsel %vm3704_vm0, %v2707_v45, %v974_v57 }
  0xa3   :  { %vm2889_vm1 = vmand %vm3701_vm3, %vm3660_vm8  ;;  %v1014_v4 = vsel %vm2862_vm13, 2143289344, %v1369_v40  ;;  %v118_v10 = vadd.f32 %v2681_v28, %v117_v56  ;;  %vm3708_vm0 = vcmp.eq.f32.partialorder %v1499_v0, 1065353216  ;;  %vm3710_vm5 = vnez %v3659_v38 }
  0xa4   :  { %vm3705_vm12 = vmmov %vm3675_vm7  ;;  %v830_v39 = vsel %vm3708_vm0, %v1588_v1, %v829_v14  ;;  %v933_v46 = vsel %vm3710_vm5, 1065353216, %v931_v32  ;;  %v983_v7 = vsel %vm2787_vm6, 2143289344, %v979_v43  ;;  %vm3714_vm5 = vcmp.ne.f32.partialorder %v1701_v51, %v1701_v51 }
  0xa5   :  { %vm2903_vm9 = vmand %vm3705_vm12, %vm3309_vm10  ;;  %vm3711_vm12 = vcmp.eq.f32.partialorder %v1701_v51, 0  ;;  %vm3713_vm10 = vcmp.eq.f32.partialorder %v1701_v51, 3212836864  ;;  %v119_v38 = vadd.f32 %v778_v49, %v118_v10  ;;  %vm3717_vm6 = vcmp.eq.f32.partialorder %v1499_v0, 0 }
  0xa6   :  { %vm3709_vm13 = vmmov %vm3708_vm0  ;;  %v1016_v13 = vsel %vm3711_vm12, %v1687_v44, %v1014_v4  ;;  %v1025_v1 = vsel %vm3713_vm10, 1065353216, %v1023_v63  ;;  %vm1115_vm10 = vcmp.gt.f32.partialorder %v2566_v42, 1065353216  ;;  %v1066_v12 = vsel %vm2889_vm1, 2143289344, %v1373_v33 }
  0xa7   :  { %v882_v45 = vsel %vm3709_vm13, %v1592_v3, %v881_v29  ;;  %vm3712_vm3 = vmmov %vm3675_vm7  ;;  %v1018_v28 = vxor.u32 2147483648, %v1016_v13  ;;  %v1145_v3 = vmul.f32 %v1371_v26, %v1499_v0  ;;  %v934_v24 = vsel %vm3709_vm13, %v1627_v16, %v933_v46 }
  0xa8   :  { %vm1073_vm7 = vmxor %vm3712_vm3, %vm1063_vm15  ;;  %v126_v41 = vadd.f32 %v882_v45, %v830_v39  ;;  %vm3721_vm12 = vcmp.eq.f32.partialorder %v1526_v27, 2139095040  ;;  %v120_v48 = vrot.slane %v119_v38, 4  ;;  %v985_v20 = vsel %vm2839_vm14, 1065353216, %v983_v7 }
  0xa9   :  { %vm1074_vm0 = vmor %vm2903_vm9, %vm1073_vm7  ;;  %vm1112_vm7 = vcmp.eq.f32.partialorder %v3603_v15, 0  ;;  %v1019_v21 = vsel %vm2878_vm11, %v1018_v28, %v1016_v13  ;;  %vm3718_vm9 = vcmp.eq.f32.partialorder %v1701_v51, 1065353216  ;;  %1376 = vpow2.f32 %v1145_v3 }
  0xaa   :  { %vm2937_vm15 = vmor %vm3714_vm5, %vm3415_vm4  ;;  %v1075_v30 = vsel %vm1074_vm0, 2139095040, %v3411_v58  ;;  %v1026_v35 = vsel %vm3721_vm12, %v1025_v1, %v1019_v21  ;;  %vm3722_vm11 = vcmp.eq.f32.partialorder %v3538_v37, 0  ;;  %vm3723_vm0 = vcmp.lt.s32.totalorder %v3538_v37, 0 }
  0xab   :  { %vm2950_vm3 = vmor %vm3718_vm9, %vm3717_vm6  ;;  %v1068_v2 = vsel %vm3722_vm11, %v1687_v44, %v1066_v12  ;;  %vm3724_vm1 = vcmp.eq.f32.partialorder %v2280_v22, 2139095040  ;;  %vm3725_vm6 = vcmp.eq.f32.partialorder %v3538_v37, 3212836864  ;;  %vm3726_vm9 = vcmp.ne.f32.partialorder %v3538_v37, %v3538_v37 }
  0xac   :  { %vm1069_vm5 = vmand %vm3723_vm0, %vm3599_vm2  ;;  %v1031_v16 = vsel %vm3724_vm1, %v2809_v59, %v1026_v35  ;;  %v1070_v52 = vxor.u32 2147483648, %v1068_v2  ;;  %v1077_v11 = vsel %vm3725_vm6, 1065353216, %v1075_v30  ;;  %vm3729_vm14 = vcmp.lt.f32.partialorder %v3538_v37, 0 }
  0xad   :  { %vm2980_vm13 = vmor %vm3726_vm9, %vm3415_vm4  ;;  %v1035_v36 = vsel %vm2937_vm15, 2143289344, %v1031_v16  ;;  %v1082_v22 = vsel %vm3729_vm14, %v1706_v53, %v1612_v9  ;;  %vm3310_vm12 = vcmp.lt.f32.partialorder %v3603_v15, 0  ;;  %vm3730_vm11 = vcmp.lt.f32.partialorder %v1499_v0, 0 }
  0xae   :  { %vm2995_vm0 = vmand %vm3730_vm11, %vm1112_vm7  ;;  %v121_v49 = vadd.f32 %v120_v48, %v119_v38  ;;  %vm1061_vm1 = vcmp.eq.f32.partialorder %v3538_v37, 1065353216  ;;  %v1071_v47 = vsel %vm1069_vm5, %v1070_v52, %v1068_v2  ;;  %v127_v60 = vadd.f32 %v934_v24, %v126_v41 }
  0xaf   :  { %vm3733_vm15 = vmmov %vm3730_vm11  ;;  %vm3736_vm9 = vcmp.eq.f32.partialorder %v1499_v0, 1065353216  ;;  %vm3737_vm14 = vcmp.eq.f32.partialorder %v1526_v27, 2139095040  ;;  %vm1114_vm11 = vcmp.lt.s32.totalorder %v3603_v15, 0  ;;  %v1037_v32 = vsel %vm2950_vm3, 1065353216, %v1035_v36  ;;  %v1375_v56 = vpop.eup %1374 }
  0xb0   :  { %vm3004_vm6 = vmxor %vm3733_vm15, %vm1115_vm10  ;;  %v986_v54 = vsel %vm3736_vm9, %v3596_v55, %v985_v20  ;;  %v1078_v62 = vsel %vm3737_vm14, %v1077_v11, %v1071_v47  ;;  %v122_v29 = vrot.slane %v121_v49, 2  ;;  %vm3738_vm10 = vcmp.eq.f32.partialorder %v3694_v61, 2139095040 }
  0xb1   :  { %vm1126_vm5 = vmor %vm2995_vm0, %vm3004_vm6  ;;  %v1083_v57 = vsel %vm3738_vm10, %v1082_v22, %v1078_v62  ;;  %vm3311_vm9 = vcmp.lt.f32.partialorder %v3637_v6, 0  ;;  %vm3741_vm0 = vcmp.eq.f32.partialorder %v1499_v0, 0  ;;  %vm3312_vm3 = vcmp.eq.f32.partialorder %v3637_v6, 0 }
  0xb2   :  { %vm3026_vm15 = vmand %vm3310_vm12, %vm3660_vm8  ;;  %v1087_v25 = vsel %vm2980_vm13, 2143289344, %v1083_v57  ;;  %v123_v61 = vadd.f32 %v122_v29, %v121_v49  ;;  %v1127_v63 = vsel %vm1126_vm5, 2139095040, %v3411_v58  ;;  %vm1128_vm10 = vcmp.eq.f32.partialorder %v3603_v15, 3212836864 }
  0xb3   :  { %vm1088_vm6 = vmor %vm1061_vm1, %vm3741_vm0  ;;  %vm1167_vm12 = vcmp.gt.f32.partialorder %v2676_v34, 1065353216  ;;  %v128_v8 = vadd.f32 %v986_v54, %v127_v60  ;;  %vm3744_vm13 = vcmp.eq.f32.partialorder %v1499_v0, 1065353216  ;;  %v1118_v4 = vsel %vm3026_vm15, 2143289344, %v1375_v56 }
  0xb4   :  { %vm3038_vm14 = vmand %vm1114_vm11, %vm3599_vm2  ;;  %v1038_v43 = vsel %vm3744_vm13, %v1701_v51, %v1037_v32  ;;  %v124_v10 = vrot.slane %v123_v61, 1  ;;  %v1089_v26 = vsel %vm1088_vm6, 1065353216, %v1087_v25  ;;  %vm1113_vm11 = vcmp.eq.f32.partialorder %v3603_v15, 1065353216 }
  0xb5   :  { %vm3054_vm1 = vmand %vm3311_vm9, %vm3660_vm8  ;;  %v1120_v39 = vsel %vm1112_vm7, %v1687_v44, %v1118_v4  ;;  %vm1136_vm5 = vcmp.ne.f32.partialorder %v3603_v15, %v3603_v15  ;;  %vm3747_vm15 = vcmp.lt.f32.partialorder %v1499_v0, 0  ;;  %vm1116_vm8 = vcmp.eq.f32.partialorder %v2566_v42, 2139095040 }
  0xb6   :  { %vm3068_vm0 = vmand %vm3747_vm15, %vm3312_vm3  ;;  %v1122_v51 = vxor.u32 2147483648, %v1120_v39  ;;  %v1129_v45 = vsel %vm1128_vm10, 1065353216, %v1127_v63  ;;  %v125_v46 = vadd.f32 %v124_v10, %v123_v61  ;;  %vm3751_vm7 = vcmp.lt.f32.partialorder %v3603_v15, 0  ;;  %v1377_v1 = vpop.eup %1376 }
  0xb7   :  { %vm3750_vm6 = vmmov %vm3747_vm15  ;;  %v1134_v13 = vsel %vm3751_vm7, %v1706_v53, %v1612_v9  ;;  %vm1166_vm9 = vcmp.lt.s32.totalorder %v3637_v6, 0  ;;  %vm1180_vm3 = vcmp.eq.f32.partialorder %v3637_v6, 3212836864  ;;  %v129_v28 = vadd.f32 %v1038_v43, %v128_v8 }
  0xb8   :  { %vm1177_vm13 = vmxor %vm3750_vm6, %vm1167_vm12  ;;  %vm3752_vm10 = vcmp.eq.f32.partialorder %v1499_v0, 1065353216  ;;  %v1123_v38 = vsel %vm3038_vm14, %v1122_v51, %v1120_v39  ;;  %v3098_v19 = vmul.f32 0.015625, %v125_v46  ;;  %vm3756_vm6 = vcmp.eq.f32.partialorder %v1499_v0, 0 }
  0xb9   :  { %vm1178_vm15 = vmor %vm3068_vm0, %vm1177_vm13  ;;  %v1090_v3 = vsel %vm3752_vm10, %v3538_v37, %v1089_v26  ;;  %vm3755_vm0 = vcmp.eq.f32.partialorder %v1526_v27, 2139095040  ;;  %vm1165_vm13 = vcmp.eq.f32.partialorder %v3637_v6, 1065353216  ;;  %v1170_v37 = vsel %vm3054_vm1, 2143289344, %v1377_v1 }
  0xba   :  { %vm3093_vm12 = vmor %vm1136_vm5, %vm3415_vm4  ;;  %v1179_v7 = vsel %vm1178_vm15, 2139095040, %v3411_v58  ;;  %v1130_v30 = vsel %vm3755_vm0, %v1129_v45, %v1123_v38  ;;  %vm3757_vm5 = vcmp.eq.f32.partialorder %v3637_v6, 0  ;;  %v3121_v12 = vand.u32 2147483647, %v3098_v19 }
  0xbb   :  { %vm1140_vm14 = vmor %vm1113_vm11, %vm3756_vm6  ;;  %v1135_v21 = vsel %vm1116_vm8, %v1134_v13, %v1130_v30  ;;  %v1172_v31 = vsel %vm3757_vm5, %v1687_v44, %v1170_v37  ;;  %vm1188_vm11 = vcmp.ne.f32.partialorder %v3637_v6, %v3637_v6  ;;  %v1181_v24 = vsel %vm1180_vm3, 1065353216, %v1179_v7 }
  0xbc   :  { %vm1173_vm7 = vmand %vm1166_vm9, %vm3599_vm2  ;;  %v1139_v41 = vsel %vm3093_vm12, 2143289344, %v1135_v21  ;;  %v1174_v42 = vxor.u32 2147483648, %v1172_v31  ;;  %v130_v35 = vadd.f32 %v1090_v3, %v129_v28  ;;  %vm1168_vm1 = vcmp.eq.f32.partialorder %v2676_v34, 2139095040 }
  0xbd   :  { %v1141_v44 = vsel %vm1140_vm14, 1065353216, %v1139_v41  ;;  %vm3758_vm2 = vcmp.lt.f32.partialorder %v3637_v6, 0  ;;  %vm3759_vm9 = vmmov %vm3752_vm10  ;;  %1378 = vlog2.f32 %v3121_v12  ;;  %v3147_v22 = vstv %s1196_s0 }
  0xbe   :  { %v1186_v5 = vsel %vm3758_vm2, %v1706_v53, %v1612_v9  ;;  %v1142_v2 = vsel %vm3759_vm9, %v3603_v15, %v1141_v44  ;;  %v1175_v48 = vsel %vm1173_vm7, %v1174_v42, %v1172_v31  ;;  %vm1190_vm8 = vmor %vm1188_vm11, %vm3415_vm4  ;;  %v3153_v60 = vand.u32 2147483647, %v3147_v22 }
  0xbf   :  { %vm3760_vm3 = vmmov %vm3755_vm0  ;;  %v131_v9 = vadd.f32 %v1142_v2, %v130_v35  ;;  %v1206_v54 = vtrunc.f32 %v3147_v22  ;;  %vm1221_vm7 = vcmp.gt.f32.partialorder %v3121_v12, 1065353216  ;;  %vm1205_vm11 = vcmp.lt.f32.partialorder %v3147_v22, 0  ;;  %v271_v2 = vld [vmem:[%s3275_s3] ss:$0 sm:$0xff] }
  0xc0   :  { %v1182_v20 = vsel %vm3760_vm3, %v1181_v24, %v1175_v48  ;;  %vm3761_vm15 = vmmov %vm3756_vm6  ;;  %vm1202_vm4 = vcmp.eq.f32.partialorder %v3153_v60, 2139095040  ;;  %vm1217_vm6 = vcmp.lt.f32.partialorder %v3098_v19, 0  ;;  %v1225_v61 = vsel %vm1205_vm11, 2139095040, %v3411_v58 }
  0xc1   :  { %vm1192_vm10 = vmor %vm1165_vm13, %vm3761_vm15  ;;  %v1187_v34 = vsel %vm1168_vm1, %v1186_v5, %v1182_v20  ;;  %vm1207_vm0 = vcmp.ne.f32.partialorder %v3147_v22, %v1206_v54  ;;  %vm1218_vm13 = vcmp.eq.f32.partialorder %v3098_v19, 0  ;;  %vm1209_vm3 = vcmp.lt.f32.partialorder %v3153_v60, 1266679808 }
  0xc2   :  { %v1191_v53 = vsel %vm1190_vm8, 2143289344, %v1187_v34  ;;  %vm3762_vm12 = vmmov %vm3759_vm9  ;;  %v3765_v63 = vmov 2139095040  }
  0xc3   :  { %v1193_v16 = vsel %vm1192_vm10, 1065353216, %v1191_v53  ;;  %vm3166_vm14 = vmor %vm1207_vm0, %vm1202_vm4  ;;  %v1237_v8 = vsel %vm1205_vm11, 0, %v3765_v63  ;;  %vm1220_vm10 = vcmp.lt.s32.totalorder %v3098_v19, 0 }
  0xc4   :  { %v1194_v15 = vsel %vm3762_vm12, %v3637_v6, %v1193_v16  ;;  %v1210_v6 = vtrunc.f32 %v3153_v60  ;;  %vm1223_vm5 = vmand %vm1217_vm6, %vm3166_vm14  ;;  %v1238_v23 = vxor.u32 2147483648, %v1237_v8 }
  0xc5   :  { %v132_v18 = vadd.f32 %v1194_v15, %v131_v9  ;;  %vm1214_vm1 = vmneg %vm3166_vm14 }
  0xc6   :  { %v1211_v62 = vcvt.f32.s32 %v1210_v6  ;;  %vm1230_vm9 = vmand %vm1205_vm11, %vm1218_vm13 }
  0xc7   :  { %v133_v52 = vrot.slane %v132_v18, 4  ;;  %vm1231_vm8 = vmxor %vm1205_vm11, %vm1221_vm7 }
  0xc8   :  { %v1212_v57 = vand.u32 1, %v1211_v62  ;;  %vm1232_vm12 = vmor %vm1230_vm9, %vm1231_vm8  ;;  %vm1222_vm9 = vcmp.eq.f32.partialorder %v3121_v12, 2139095040 }
  0xc9   :  { %v134_v11 = vadd.f32 %v133_v52, %v132_v18  ;;  %v1233_v10 = vsel %vm1232_vm12, 2139095040, %v3411_v58  ;;  %vm1203_vm12 = vcmp.eq.f32.partialorder %v3147_v22, 0 }
  0xca   :  { %v1379_v27 = vpop.eup %1378  ;;  %vm1213_vm2 = vcmp.eq.s32.totalorder %v1212_v57, 1 }
  0xcb   :  { %v135_v17 = vrot.slane %v134_v11, 2  ;;  %v1199_v49 = vmul.f32 %v1379_v27, %v3147_v22  ;;  %vm1215_vm15 = vmand %vm1213_vm2, %vm1214_vm1 }
  0xcc   :  { %vm3192_vm0 = vmand %vm1209_vm3, %vm1215_vm15  ;;  %vm1242_vm15 = vcmp.ne.f32.partialorder %v3098_v19, %v3098_v19 }
  0xcd   :  { %v136_v36 = vadd.f32 %v135_v17, %v134_v11  ;;  %1380 = vpow2.f32 %v1199_v49  ;;  %v1239_v50 = vsel %vm3192_vm0, %v1238_v23, %v1237_v8 }
  0xce   :  { %v1240_v13 = vsel %vm1217_vm6, %v1239_v50, %v1237_v8 }
  0xcf   :  { %v137_v59 = vrot.slane %v136_v36, 1 }
  0xd1   :  { %v138_v47 = vadd.f32 %v137_v59, %v136_v36 }
  0xd3   :  { %v3150_v14 = vmul.f32 0.015625, %v138_v47 }
  0xd5   :  { %v3156_v0 = vand.u32 2147483647, %v3150_v14  ;;  %vm1270_vm7 = vcmp.eq.f32.partialorder %v3150_v14, 0  ;;  %vm1269_vm3 = vcmp.lt.f32.partialorder %v3150_v14, 0 }
  0xd6   :  { %vm3208_vm2 = vmand %vm1205_vm11, %vm1270_vm7  ;;  %v1292_v12 = vsel %vm1269_vm3, %v1239_v50, %v1237_v8 }
  0xd7   :  { %1382 = vlog2.f32 %v3156_v0  ;;  %vm1273_vm1 = vcmp.gt.f32.partialorder %v3156_v0, 1065353216  ;;  %vm1275_vm6 = vmand %vm1269_vm3, %vm3166_vm14  ;;  %vm1274_vm14 = vcmp.eq.f32.partialorder %v3156_v0, 2139095040 }
  0xd8   :  { %vm3217_vm8 = vmxor %vm1205_vm11, %vm1273_vm1  ;;  %vm1272_vm1 = vcmp.lt.s32.totalorder %v3150_v14, 0 }
  0xd9   :  { %vm1284_vm11 = vmor %vm3208_vm2, %vm3217_vm8  ;;  %vm1286_vm2 = vcmp.eq.f32.partialorder %v3150_v14, 3212836864 }
  0xda   :  { %v1381_v29 = vpop.eup %1380  ;;  %v1285_v7 = vsel %vm1284_vm11, 2139095040, %v3411_v58  ;;  %vm1279_vm8 = vmand %vm1272_vm1, %vm3192_vm0 }
  0xdb   :  { %v1224_v55 = vsel %vm1223_vm5, 2143289344, %v1381_v29  ;;  %vm1234_vm5 = vcmp.eq.f32.partialorder %v3098_v19, 3212836864  ;;  %v1287_v31 = vsel %vm1286_vm2, 1065353216, %v1285_v7 }
  0xdc   :  { %v1226_v40 = vsel %vm1218_vm13, %v1225_v61, %v1224_v55  ;;  %vm1227_vm13 = vmand %vm1220_vm10, %vm3192_vm0  ;;  %v1235_v39 = vsel %vm1234_vm5, 1065353216, %v1233_v10  ;;  %vm1243_vm10 = vcmp.ne.f32.partialorder %v3147_v22, %v3147_v22 }
  0xdd   :  { %v1228_v43 = vxor.u32 2147483648, %v1226_v40  ;;  %vm1244_vm5 = vmor %vm1242_vm15, %vm1243_vm10  ;;  %vm1294_vm15 = vcmp.ne.f32.partialorder %v3150_v14, %v3150_v14 }
  0xde   :  { %vm1296_vm0 = vmor %vm1294_vm15, %vm1243_vm10 }
  0xdf   :  { %v1229_v26 = vsel %vm1227_vm13, %v1228_v43, %v1226_v40  ;;  %vm1219_vm13 = vcmp.eq.f32.partialorder %v3098_v19, 1065353216 }
  0xe0   :  { %v1236_v45 = vsel %vm1202_vm4, %v1235_v39, %v1229_v26 }
  0xe1   :  { %v1241_v28 = vsel %vm1222_vm9, %v1240_v13, %v1236_v45  ;;  %vm1246_vm9 = vmor %vm1219_vm13, %vm1203_vm12  ;;  %vm173_vm13 = vcmask 1041409  }
  0xe2   :  { %v1245_v38 = vsel %vm1244_vm5, 2143289344, %v1241_v28 }
  0xe3   :  { %v1247_v37 = vsel %vm1246_vm9, 1065353216, %v1245_v38 }
  0xe4   :  { %v1383_v25 = vpop.eup %1382 }
  0xe5   :  { %v1251_v56 = vmul.f32 %v1383_v25, %v3147_v22 }
  0xe7   :  { %1384 = vpow2.f32 %v1251_v56 }
  0xf4   :  { %v1385_v1 = vpop.eup %1384 }
  0xf5   :  { %v1276_v3 = vsel %vm1275_vm6, 2143289344, %v1385_v1  ;;  %vm1271_vm6 = vcmp.eq.f32.partialorder %v3150_v14, 1065353216 }
  0xf6   :  { %v1278_v33 = vsel %vm1270_vm7, %v1225_v61, %v1276_v3  ;;  %vm1204_vm7 = vcmp.eq.f32.partialorder %v3147_v22, 1065353216  ;;  %vm1298_vm11 = vmor %vm1271_vm6, %vm1203_vm12 }
  0xf7   :  { %v1280_v30 = vxor.u32 2147483648, %v1278_v33  ;;  %v1248_v42 = vsel %vm1204_vm7, %v3098_v19, %v1247_v37 }
  0xf9   :  { %v1281_v21 = vsel %vm1279_vm8, %v1280_v30, %v1278_v33 }
  0xfa   :  { %v1288_v58 = vsel %vm1202_vm4, %v1287_v31, %v1281_v21  ;;  %vm247_vm4 = vcmask 1041408  }
  0xfb   :  { %v1293_v41 = vsel %vm1274_vm14, %v1292_v12, %v1288_v58 }
  0xfc   :  { %v1297_v24 = vsel %vm1296_vm0, 2143289344, %v1293_v41 }
  0xfd   :  { %v1299_v35 = vsel %vm1298_vm11, 1065353216, %v1297_v24 }
  0xfe   :  { %v1300_v44 = vsel %vm1204_vm7, %v3150_v14, %v1299_v35 }
  0xff   :  { %v174_v5 = vsel %vm173_vm13, %v1300_v44, %v1248_v42 }
 0x100   :  { %361 = vmatmul.mubr.f32.vlgmr.msra.gmra.mxu0 %v174_v5 }
 0x1c0   :  { %v242_v48 = vpop.f32.mrf.mxu0 }
 0x1c1   :  { %v243_v20 = vadd.f32 %v271_v2, %v242_v48 }
 0x1c2   :  { %v362_v34 = vpop.f32.mrf.mxu0 }
 0x1c3   :  { %v246_v9 = vmul.f32 %v243_v20, %v243_v20 }
 0x1c5   :  { %v248_v19 = vsel %vm247_vm4, %v246_v9, 0.0 }
 0x1c6   :  { %249 = vadd.xlane.f32.xlu0 %v248_v19 }
 0x24f   :  { %v250_v53 = vpop.xlane.xlu0 %249 }
 0x250   :  { %v251_v16 = vmax.f32 %v250_v53, 1e-24 }
 0x252   :  { %1386 = vrsqrt.f32 %v251_v16 }
 0x25f   :  { %v1387_v15 = vpop.eup %1386 }
 0x260   :  { %v253_v18 = vmul.f32 %v1387_v15, %v243_v20 }
 0x262   :  { %254 = vst [vmem:[#allocation8] sm:$0x3] %v253_v18 }
 0x263   :  { %1439 = shalt.err (!%p1436_p0)
}
 0x264   :  { %264 = dma.vmem_to_hbm [thread:$0]  %s262_s6, 32, %s3276_s4, [#allocation5]  }
 0x265   :  { %1452 = dma.done.wait [#allocation5], 32  }
 0x266   :  { %1453 = vsyncadd [#allocation5], 4294967264 }
 0x267   :  { %268 = vsyncpa [#allocation4], 1 }
 0x268   :  { %269 = vsyncpa [#allocation7], 1 }
 0x269   :  { %270 = vsyncpa [#allocation5], 1 }

</bundles_post_ra>
